<compile_context>
chip_gen: v7x
topology: tpu7x:2x2x1
jax: 0.10.0
libtpu: 0.0.40
codegen_flags: <defaults>
</compile_context>

<pallas_src>
import functools

import jax
import jax.numpy as jnp
from jax.experimental import pallas as pl
from jax.experimental.pallas import tpu as pltpu


def _rmsnorm_kernel(x_ref, scale_ref, o_ref, *, eps: float):
    # x_ref:     (TM, D) tile of the input
    # scale_ref: (1, D)  per-feature scale (same block every grid step)
    # o_ref:     (TM, D) output tile
    x = x_ref[...].astype(jnp.float32)                          # (TM, D)
    scale = scale_ref[...].astype(jnp.float32)                  # (1, D)

    # Per-row L2 norm: lane (XLU) reduction; sqrt only on the (TM, 1) column.
    norm = jnp.sqrt(jnp.sum(x * x, axis=-1, keepdims=True))     # (TM, 1)

    # EUP approximate reciprocal + one Newton step (~f32 accurate), computed only
    # on the small column/row (TM + D elements instead of TM*D). Guard zeros:
    # those entries are clamped away by the select below, but must not produce
    # inf/NaN on the not-taken branch.
    safe_norm = jnp.maximum(norm, jnp.float32(1e-30))
    safe_scale = jnp.where(scale == 0.0, jnp.float32(1.0), scale)
    inv_norm = pl.reciprocal(safe_norm, approx=True)
    inv_norm = inv_norm * (2.0 - safe_norm * inv_norm)           # (TM, 1)
    inv_scale = pl.reciprocal(safe_scale, approx=True)
    inv_scale = inv_scale * (2.0 - safe_scale * inv_scale)       # (1, D)

    # out = x / clamp(scale * norm, min=eps)
    use_rms = (norm * scale) > eps                               # (TM, D)
    inv = jnp.where(use_rms, inv_norm * inv_scale, jnp.float32(1.0 / eps))
    o_ref[...] = (x * inv).astype(o_ref.dtype)


def _round_up(n: int, m: int) -> int:
    return ((n + m - 1) // m) * m


def _sublane_multiple(dtype) -> int:
    # f32 -> 8, bf16/f16 -> 16, int8/fp8 -> 32 (sub-32-bit dtypes pack sublanes).
    itemsize = jnp.dtype(dtype).itemsize
    return 8 * max(1, 4 // itemsize)


def _default_vmem_limit_bytes() -> int:
    """Generation-aware VMEM limit with headroom for compiler-internal scratch."""
    try:
        cap = int(pltpu.get_tpu_info().vmem_capacity_bytes)
    except Exception:
        cap = 64 * 1024 * 1024  # conservative: v7x physical VMEM, safe everywhere
    # ~40 MiB on v7x (64 MiB physical), ~80 MiB on v5e/v6e (128 MiB physical).
    return min(96 * 1024 * 1024, (cap * 5) // 8)


def _pick_tile_rows(rows: int, dim: int, dtype, *, tile_budget_bytes: int,
                    target_input_bytes: int = 8 * 1024 * 1024,
                    min_grid_steps: int = 2) -> int:
    """Row-tile size: aim for ~target_input_bytes of input per tile, bounded by the
    VMEM budget, sublane-aligned, keeping >= min_grid_steps grid steps when there is
    enough work (double-buffer overlap + both TensorCores on v7x)."""
    itemsize = jnp.dtype(dtype).itemsize
    sub = _sublane_multiple(dtype)
    # Per tile-row VMEM: double-buffered input + output tiles, plus ~4 (TM, D) f32
    # intermediates (x upcast, compare, broadcast product, pre-cast result).
    bytes_per_row = 2 * itemsize * dim + 2 * itemsize * dim + 4 * 4 * dim
    tm_by_vmem = max(sub, tile_budget_bytes // bytes_per_row)
    tm_by_target = max(sub, pl.cdiv(target_input_bytes, itemsize * dim))
    tm = min(tm_by_vmem, tm_by_target)
    tm = max(sub, (tm // sub) * sub)
    if rows >= min_grid_steps * sub:
        tm = min(tm, _round_up(pl.cdiv(rows, min_grid_steps), sub))
    else:
        # Tiny input: a single block equal to the full row extent (no (8,128)
        # divisibility requirement when block == full array dim).
        tm = rows
    return tm


def rmsnorm(x: jax.Array, scale, eps: float = 1e-8, *,
            vmem_limit_bytes: int | None = None) -> jax.Array:
    """RMSNorm over the last axis of x: x / max(scale * ||x||_2, eps)."""
    orig_shape = x.shape
    dim = orig_shape[-1]

    scale = jnp.asarray(scale)
    if scale.ndim == 0:  # weight_scaling=False -> scalar scale
        scale = jnp.full((dim,), scale, dtype=jnp.float32)
    assert scale.shape == (dim,)

    rows = 1
    for s in orig_shape[:-1]:
        rows *= s
    x2d = x.reshape(rows, dim)
    scale2d = scale.reshape(1, dim)

    if vmem_limit_bytes is None:
        vmem_limit_bytes = _default_vmem_limit_bytes()
    tile_budget = vmem_limit_bytes // 2
    tm = _pick_tile_rows(rows, dim, x.dtype, tile_budget_bytes=tile_budget)

    # No padding: ragged last block handled by Pallas (masked output writeback).
    grid = (pl.cdiv(rows, tm),)

    out2d = pl.pallas_call(
        functools.partial(_rmsnorm_kernel, eps=eps),
        out_shape=jax.ShapeDtypeStruct((rows, dim), x.dtype),
        grid_spec=pltpu.PrefetchScalarGridSpec(
            num_scalar_prefetch=0,
            grid=grid,
            in_specs=[
                pl.BlockSpec((tm, dim), lambda i: (i, 0)),
                pl.BlockSpec((1, dim), lambda i: (0, 0)),
            ],
            out_specs=pl.BlockSpec((tm, dim), lambda i: (i, 0)),
        ),
        compiler_params=pltpu.CompilerParams(
            dimension_semantics=("parallel",),
            vmem_limit_bytes=vmem_limit_bytes,
        ),
    )(x2d, scale2d)

    return out2d.reshape(orig_shape)


def rmsnorm_reference(x, scale, eps=1e-8):
    xf = x.astype(jnp.float32)
    norm = jnp.sqrt(jnp.sum(xf * xf, axis=-1, keepdims=True))
    denom = jnp.maximum(jnp.asarray(scale, jnp.float32) * norm, eps)
    return (xf / denom).astype(x.dtype)


if __name__ == "__main__":
    key = jax.random.PRNGKey(0)
    k1, k2, k3 = jax.random.split(key, 3)

    dim = 128  # lane-dense feature dim (multiple of 128 -> unmasked vst)
    # Deterministic param init, matching nn.Parameter(torch.ones(dim) * dim**-0.5)
    scale = jnp.ones((dim,), dtype=jnp.float32) * (dim ** -0.5)

    # Main case: rows divide evenly into two 512-row tiles (2 grid steps).
    x = jax.random.normal(k1, (2, 512, dim), dtype=jnp.float32)
    out = jax.block_until_ready(rmsnorm(x, scale, eps=1e-8))
    ref = rmsnorm_reference(x, scale, eps=1e-8)
    assert out.shape == x.shape
    assert jnp.allclose(out, ref, atol=1e-4, rtol=1e-4), "mismatch vs reference"

    # Ragged grid: rows % tm != 0 -> last block overhangs; no pad/slice round trips.
    x_ragged = jax.random.normal(k2, (3, 333, dim), dtype=jnp.float32)
    out_r = jax.block_until_ready(rmsnorm(x_ragged, scale, eps=1e-8))
    ref_r = rmsnorm_reference(x_ragged, scale, eps=1e-8)
    assert out_r.shape == x_ragged.shape
    assert jnp.allclose(out_r, ref_r, atol=1e-4, rtol=1e-4), "mismatch (ragged grid)"

    # Tiny row count -> single full-extent block (block rows == array rows).
    x_tiny = jax.random.normal(k3, (3, 5, dim), dtype=jnp.float32)
    out_t = jax.block_until_ready(rmsnorm(x_tiny, scale, eps=1e-8))
    ref_t = rmsnorm_reference(x_tiny, scale, eps=1e-8)
    assert out_t.shape == x_tiny.shape
    assert jnp.allclose(out_t, ref_t, atol=1e-4, rtol=1e-4), "mismatch (tiny input)"

    print("KERNEL_OK")
</pallas_src>

<mosaic_0001>
module attributes {stable_mosaic.version = 11 : i64} {
  func.func @_rmsnorm_kernel(%arg0: i32, %arg1: memref<512x128xf32, #tpu.memory_space<vmem>>, %arg2: memref<1x128xf32, #tpu.memory_space<vmem>>, %arg3: memref<512x128xf32, #tpu.memory_space<vmem>>) attributes {dimension_semantics = [#tpu.dimension_semantics<parallel>], iteration_bounds = array<i64: 2>, scalar_prefetch = 0 : i64, scratch_operands = 0 : i64, tpu.core_type = #tpu.core_type<tc>, window_params = [{transform_indices = @transform_0, window_bounds = array<i64: 512, 128>}, {pipeline_mode = #tpu.pipeline_mode<synchronous>, transform_indices = @transform_1, window_bounds = array<i64: 1, 128>}, {transform_indices = @transform_2, window_bounds = array<i64: 512, 128>}]} {
    %c0 = arith.constant 0 : index
    %c0_0 = arith.constant 0 : index
    %0 = vector.load %arg1[%c0, %c0_0] : memref<512x128xf32, #tpu.memory_space<vmem>>, vector<512x128xf32>
    %c0_1 = arith.constant 0 : index
    %c0_2 = arith.constant 0 : index
    %1 = vector.load %arg2[%c0_1, %c0_2] : memref<1x128xf32, #tpu.memory_space<vmem>>, vector<1x128xf32>
    %2 = arith.mulf %0, %0 : vector<512x128xf32>
    %cst = arith.constant dense<0.000000e+00> : vector<512xf32>
    %3 = vector.multi_reduction <add>, %2, %cst [1] : vector<512x128xf32> to vector<512xf32>
    %4 = vector.shape_cast %3 : vector<512xf32> to vector<512x1xf32>
    %5 = math.sqrt %4 : vector<512x1xf32>
    %cst_3 = arith.constant 1.000000e-30 : f32
    %6 = vector.broadcast %cst_3 : f32 to vector<512x1xf32>
    %7 = arith.maximumf %5, %6 : vector<512x1xf32>
    %cst_4 = arith.constant 0.000000e+00 : f32
    %8 = vector.broadcast %cst_4 : f32 to vector<1x128xf32>
    %9 = arith.cmpf oeq, %1, %8 : vector<1x128xf32>
    %cst_5 = arith.constant 1.000000e+00 : f32
    %10 = vector.broadcast %cst_5 : f32 to vector<1x128xf32>
    %11 = arith.select %9, %10, %1 : vector<1x128xi1>, vector<1x128xf32>
    %12 = tpu.reciprocal %7 {approx = true} : vector<512x1xf32> -> vector<512x1xf32>
    %13 = arith.mulf %7, %12 : vector<512x1xf32>
    %cst_6 = arith.constant 2.000000e+00 : f32
    %14 = vector.broadcast %cst_6 : f32 to vector<512x1xf32>
    %15 = arith.subf %14, %13 : vector<512x1xf32>
    %16 = arith.mulf %12, %15 : vector<512x1xf32>
    %17 = tpu.reciprocal %11 {approx = true} : vector<1x128xf32> -> vector<1x128xf32>
    %18 = arith.mulf %11, %17 : vector<1x128xf32>
    %cst_7 = arith.constant 2.000000e+00 : f32
    %19 = vector.broadcast %cst_7 : f32 to vector<1x128xf32>
    %20 = arith.subf %19, %18 : vector<1x128xf32>
    %21 = arith.mulf %17, %20 : vector<1x128xf32>
    %22 = vector.broadcast %5 : vector<512x1xf32> to vector<512x128xf32>
    %23 = vector.broadcast %1 : vector<1x128xf32> to vector<512x128xf32>
    %24 = arith.mulf %22, %23 : vector<512x128xf32>
    %cst_8 = arith.constant 9.99999993E-9 : f32
    %25 = vector.broadcast %cst_8 : f32 to vector<512x128xf32>
    %26 = arith.cmpf ogt, %24, %25 : vector<512x128xf32>
    %27 = vector.broadcast %16 : vector<512x1xf32> to vector<512x128xf32>
    %28 = vector.broadcast %21 : vector<1x128xf32> to vector<512x128xf32>
    %29 = arith.mulf %27, %28 : vector<512x128xf32>
    %cst_9 = arith.constant 1.000000e+08 : f32
    %30 = vector.broadcast %cst_9 : f32 to vector<512x128xf32>
    %31 = arith.select %26, %29, %30 : vector<512x128xi1>, vector<512x128xf32>
    %32 = arith.mulf %0, %31 : vector<512x128xf32>
    %c0_10 = arith.constant 0 : index
    %c0_11 = arith.constant 0 : index
    %33 = vector.load %arg3[%c0_10, %c0_11] : memref<512x128xf32, #tpu.memory_space<vmem>>, vector<512x128xf32>
    tpu.vector_store %arg3[%c0_10, %c0_11], %32 {strides = array<i32>} : memref<512x128xf32, #tpu.memory_space<vmem>>, vector<512x128xf32>,
    return
  }
  func.func @transform_0(%arg0: i32) -> (i32, i32) {
    %c0_i32 = arith.constant 0 : i32
    %c0_i32_0 = arith.constant 0 : i32
    return %arg0, %c0_i32 : i32, i32
  }
  func.func @transform_1(%arg0: i32) -> (i32, i32) {
    %c0_i32 = arith.constant 0 : i32
    %c0_i32_0 = arith.constant 0 : i32
    %c0_i32_1 = arith.constant 0 : i32
    return %c0_i32, %c0_i32_0 : i32, i32
  }
  func.func @transform_2(%arg0: i32) -> (i32, i32) {
    %c0_i32 = arith.constant 0 : i32
    %c0_i32_0 = arith.constant 0 : i32
    return %arg0, %c0_i32 : i32, i32
  }
}

</mosaic_0001>

<bundles_post_ra>
// kernel: tpu_custom_call.1
= control target key start
LH: loop header
LB: loop body
LE: loop exit
PB: predicated region body
PF: predicated region fallthrough
CT: control target
= control target key end

     0   :  { %7 = vsyncpa [#allocation3], 0  ;;  %s3966_s0 = inlined_call_operand.hbm [shape: f32[1024,128], index: 0, kind: input, shape index: {}]   ;;  %s3967_s1 = inlined_call_operand.vmem [shape: f32[1,128], index: 1, kind: input, shape index: {}]   ;;  %s3968_s2 = inlined_call_operand.hbm [shape: f32[1024,128], index: 2, kind: output, shape index: {}]  }
   0x1   :  { %9 = vsyncpa [#allocation3 + $0x1], 0 }
   0x2   :  { %10 = vsyncpa [#allocation4], 0 }
   0x3   :  { %12 = vsyncpa [#allocation4 + $0x1], 0  ;;  %s2173_s9 = smov 0   ;;  %s2175_s10 = smov 0  }
   0x4   :  { %s2177_s11 = smov 0   ;;  %s2179_s12 = smov 0  }
   0x5 LB: > { %s2194_s13 = sadd.s32 4294967295, %s2150_s12   ;;  %s1678_s14 = sadd.s32 4294967294, %s2150_s12   ;;  %s2150_s12 = sphi %s2179_s12, %s3981_s12   ;;  %s2146_s11 = sphi %s2177_s11, %s3980_s11   ;;  %s2142_s10 = sphi %s2175_s10, %s3979_s10   ;;  %s2138_s9 = sphi %s2173_s9, %s3978_s9  }
   0x6   : > { %s2198_s15 = sadd.s32 1, %s2150_s12   ;;  %s25_s16 = sadd.s32 1, %s2146_s11 }
   0x7   : > { %s22_s17 = ssub.s32 %s2150_s12, %s2198_s15  ;;  %p32_p0 = scmp.ne.s32.totalorder %s2146_s11, %s2142_s10 }
   0x8   : > { %p23_p1 = scmp.eq.s32.totalorder %s22_s17, 0  ;;  %p33_p2 = scmp.eq.s32.totalorder %s2150_s12, 0 }
   0x9   : > { %p38_p3 = scmp.ne.s32.totalorder %s2142_s10, %s2138_s9  ;;  %p39_p4 = scmp.eq.s32.totalorder %s2194_s13, 0 }
   0xa   : > { %s2210_s18 = scalar_select %p23_p1, %s2146_s11, %s25_s16  }
   0xb   : > { %p2212_p5 = por %p33_p2, %p32_p0  ;;  %p2216_p6 = por %p39_p4, %p38_p3 }
   0xc   : > { %p83_p7 = scmp.eq.s32.totalorder %s2194_s13, 1  ;;  %p89_p8 = scmp.eq.s32.totalorder %s1678_s14, 1 }
   0xd   : > { %p1706_p10 = scmp.lt.s32.totalorder %s2150_s12, 2  ;;  %s112_s23 = sand.u32 1, %s2146_s11  }
   0xe   : > { %p2223_p11 = por %p83_p7, %p32_p0  ;;  %p2227_p12 = por %p89_p8, %p38_p3 }
   0xf   : > { %s1692_s24 = sshll.u32 %s2150_s12, 13  ;;  %s1681_s25 = sshll.u32 %s112_s23, 9 }
  0x10   : > { %s3972_s21 = scalar_select %p2223_p11, 1, 0 }
  0x11   : > { %s3973_s22 = scalar_select %p2227_p12, 1, 0 }
  0x12   : > { %s2236_s28 = scalar_lea.hbm %s3966_s0, %s1692_s24  ;;  %s116_s29 = scalar_lea.vmem [#allocation2], %s1681_s25 }
  0x13   : > { %s123_s30 = sshll.u32 %s116_s29, 4  ;;  %p2240_p13 = pnand %p1706_p10, %p2212_p5  ;;  %s2244_s30 = int_to_ptr.vmem [resolvable:$true] %s123_s30 }
  0x14   : > { %s2246_s4 = scalar_lea.sflag [#allocation3], %s112_s23  ;;  %s2054_s5 = scalar_lea.hbm %s2236_s28, 8192 }
  0x15   : > { %p2055_p0 = scmp.ne.s32.totalorder %s2236_s28, %s2054_s5  ;;  %p2056_p1 = pneg %p2240_p13 }
  0x16   : > { %s2059_s8 = scalar_lea.hbm %s3966_s0, 16384  ;;  %p2060_p4 = scmp.lt.u32.totalorder %s2236_s28, %s3966_s0 }
  0x17   : > { %p2057_p2 = pnand %p2056_p1, %p2055_p0  ;;  %p2061_p5 = scmp.lt.u32.totalorder %s2059_s8, %s2054_s5 }
  0x18   : > { %p2063_p8 = scmp.lt.u32.totalorder %s2054_s5, %s2236_s28 }
  0x19   : > { %p2058_p3 = pneg %p2057_p2  ;;  %p2062_p7 = por %p2061_p5, %p2060_p4 }
  0x1b   : > { %p2064_p10 = por %p2063_p8, %p2062_p7 }
  0x1d   : > { %p2065_p9 = pnand %p2064_p10, %p2058_p3 }
  0x1f   : > { %2068 = shalt.err (!%p2065_p9)
}
  0x20   : > { %s2069_s17 = scalar_lea.vmem %s2244_s30, 8192  ;;  %s2152_s19 = smov [#allocation2]  }
  0x21   : > { %p2070_p0 = scmp.ne.s32.totalorder %s2244_s30, %s2069_s17  ;;  %s2074_s23 = sshll.u32 %s2152_s19, 4  ;;  %s2075_s23 = int_to_ptr.vmem [resolvable:$false] %s2074_s23 }
  0x22   : > { %s2076_s24 = scalar_lea.vmem %s2075_s23, 16384  ;;  %p2077_p11 = scmp.lt.s32.totalorder %s2244_s30, %s2075_s23 }
  0x23   : > { %p2072_p2 = pnand %p2070_p0, %p2056_p1  ;;  %p2078_p4 = scmp.lt.s32.totalorder %s2076_s24, %s2069_s17 }
  0x25   : > { %p2073_p12 = pneg %p2072_p2  ;;  %p2079_p5 = por %p2078_p4, %p2077_p11 }
  0x27   : > { %p2080_p7 = pnand %p2079_p5, %p2073_p12 }
  0x29   : > { %2083 = shalt.err (!%p2080_p7)
}
  0x2a   : > { %s2153_s25 = smov 128   ;;  %s2154_s26 = smov 8  }
  0x2b   : > { %1701 = dma.hbm_to_vmem [thread:$0]  (!%p2240_p13), %s2236_s28, 8192, %s2244_s30, %s2246_s4, %s2153_s25, %s2153_s25, %s2154_s26  }
  0x2c   : > { %p1684_p9 = scmp.ge.s32.totalorder %s2150_s12, 1  ;;  %p131_p1 = scmp.lt.s32.totalorder %s2150_s12, 3 }
  0x2e   : > { %p132_p3 = pnand %p1684_p9, %p131_p1 }
  0x2f   : > { %s2277_s27 = sand.u32 (!%p132_p3), 1, %s2142_s10  }
  0x30   : > { %135 = sbr.rel (%p132_p3) target bundleno = 510 (0x1fe), region = 28  ;;  %s1685_s29 = sshll.u32 (!%p132_p3), %s2277_s27, 9 }
  0x31   : > { %s138_s5 = scalar_lea.sflag (!%p132_p3), [#allocation3], %s2277_s27  ;;  %s2283_s6 = scalar_lea.vmem (!%p132_p3), [#allocation2], %s1685_s29 }
  0x37   : > { %2129 = dma.done.wait (%p2216_p6), %s138_s5, 8192  }
  0x38   : > { %2131 = vsyncadd (%p2216_p6), %s138_s5, 4294959104  ;;  %v2290_v0 = vld [vmem:[%s2283_s6 + $0x10] sm:$0xff]  ;;  %v2293_v1 = vld [vmem:[%s2283_s6] sm:$0xff]  ;;  %s2584_s30 = scalar_lea.vmem [#allocation5], %s1685_s29  ;;  %s1693_s3 = sshll.u32 %s2194_s13, 13 }
  0x39   : > { %v2296_v2 = vld [vmem:[%s2283_s6 + $0x18] sm:$0xff]  ;;  %v231_v3 = vmul.f32 %v2290_v0, %v2290_v0  ;;  %v229_v4 = vmul.f32 %v2293_v1, %v2293_v1  ;;  %v2303_v5 = vld [vmem:[%s2283_s6 + $0x8] sm:$0xff]  ;;  %v2313_v9 = vld [vmem:[%s2283_s6 + $0x20] sm:$0xff]  ;;  %s1605_s4 = sshll.u32 %s2584_s30, 4  ;;  %s3917_s14 = scalar_lea.hbm %s3968_s2, %s1693_s3  ;;  %s3919_s4 = int_to_ptr.vmem [resolvable:$true] %s1605_s4 }
  0x3a   : > { %v232_v6 = vmul.f32 %v2296_v2, %v2296_v2  ;;  %v230_v7 = vmul.f32 %v2303_v5, %v2303_v5  ;;  %v2310_v8 = vld [vmem:[%s2283_s6 + $0x28] sm:$0xff]  ;;  %v233_v11 = vmul.f32 %v2313_v9, %v2313_v9  ;;  %v2320_v12 = vld [vmem:[%s2283_s6 + $0x38] sm:$0xff]  ;;  %v2323_v13 = vld [vmem:[%s2283_s6 + $0x30] sm:$0xff]  ;;  %s1592_s13 = scalar_lea.sflag [#allocation4], %s2277_s27  ;;  %s2084_s16 = scalar_lea.vmem %s3919_s4, 8192 }
  0x3b   : > { %297 = vadd.xlane.f32.xlu1 %v231_v3  ;;  %293 = vadd.xlane.f32.xlu0 %v229_v4  ;;  %v234_v10 = vmul.f32 %v2310_v8, %v2310_v8  ;;  %v236_v14 = vmul.f32 %v2320_v12, %v2320_v12  ;;  %v235_v15 = vmul.f32 %v2323_v13, %v2323_v13  ;;  %v2330_v16 = vld [vmem:[%s2283_s6 + $0x48] sm:$0xff]  ;;  %v2333_v17 = vld [vmem:[%s2283_s6 + $0x40] sm:$0xff]  ;;  %v2340_v20 = vld [vmem:[%s2283_s6 + $0x58] sm:$0xff]  ;;  %p2085_p6 = scmp.ne.s32.totalorder %s3919_s4, %s2084_s16  ;;  %p3975_p11 = scmp.ne.s32.totalorder %s3972_s21, 0 }
  0x3c   : > { %v238_v18 = vmul.f32 %v2330_v16, %v2330_v16  ;;  %v237_v19 = vmul.f32 %v2333_v17, %v2333_v17  ;;  %v2343_v21 = vld [vmem:[%s2283_s6 + $0x50] sm:$0xff]  ;;  %v240_v22 = vmul.f32 %v2340_v20, %v2340_v20  ;;  %v177_v24 = vld [vmem:[%s2283_s6 + $0x68] sm:$0xff]  ;;  %v176_v25 = vld [vmem:[%s2283_s6 + $0x60] sm:$0xff]  ;;  %s2155_s17 = smov [#allocation5]  }
  0x3d   : > { %v239_v23 = vmul.f32 %v2343_v21, %v2343_v21  ;;  %v242_v26 = vmul.f32 %v177_v24, %v177_v24  ;;  %v241_v27 = vmul.f32 %v176_v25, %v176_v25  ;;  %v179_v28 = vld [vmem:[%s2283_s6 + $0x78] sm:$0xff]  ;;  %v178_v29 = vld [vmem:[%s2283_s6 + $0x70] sm:$0xff]  ;;  %v181_v32 = vld [vmem:[%s2283_s6 + $0x88] sm:$0xff]  ;;  %p2086_p12 = pnand %p2085_p6, %p3975_p11  ;;  %s2088_s19 = sshll.u32 %s2155_s17, 4  ;;  %s2089_s19 = int_to_ptr.vmem [resolvable:$false] %s2088_s19 }
  0x3e   : > { %v244_v30 = vmul.f32 %v179_v28, %v179_v28  ;;  %v243_v31 = vmul.f32 %v178_v29, %v178_v29  ;;  %v180_v33 = vld [vmem:[%s2283_s6 + $0x80] sm:$0xff]  ;;  %v246_v34 = vmul.f32 %v181_v32, %v181_v32  ;;  %v183_v36 = vld [vmem:[%s2283_s6 + $0x98] sm:$0xff]  ;;  %v182_v37 = vld [vmem:[%s2283_s6 + $0x90] sm:$0xff]  ;;  %s2090_s23 = scalar_lea.vmem %s2089_s19, 16384  ;;  %p2091_p8 = scmp.lt.s32.totalorder %s3919_s4, %s2089_s19 }
  0x3f   : > { %299 = vadd.xlane.f32.xlu1 %v232_v6  ;;  %295 = vadd.xlane.f32.xlu0 %v230_v7  ;;  %v245_v35 = vmul.f32 %v180_v33, %v180_v33  ;;  %v248_v38 = vmul.f32 %v183_v36, %v183_v36  ;;  %v247_v39 = vmul.f32 %v182_v37, %v182_v37  ;;  %v185_v40 = vld [vmem:[%s2283_s6 + $0xa8] sm:$0xff]  ;;  %v184_v41 = vld [vmem:[%s2283_s6 + $0xa0] sm:$0xff]  ;;  %v187_v44 = vld [vmem:[%s2283_s6 + $0xb8] sm:$0xff]  ;;  %p2087_p13 = pneg %p2086_p12  ;;  %p2092_p10 = scmp.lt.s32.totalorder %s2090_s23, %s2084_s16 }
  0x40   : > { %v250_v42 = vmul.f32 %v185_v40, %v185_v40  ;;  %v249_v43 = vmul.f32 %v184_v41, %v184_v41  ;;  %v186_v45 = vld [vmem:[%s2283_s6 + $0xb0] sm:$0xff]  ;;  %v252_v46 = vmul.f32 %v187_v44, %v187_v44  ;;  %v189_v48 = vld [vmem:[%s2283_s6 + $0xc8] sm:$0xff]  ;;  %v188_v49 = vld [vmem:[%s2283_s6 + $0xc0] sm:$0xff] }
  0x41   : > { %v251_v47 = vmul.f32 %v186_v45, %v186_v45  ;;  %v254_v50 = vmul.f32 %v189_v48, %v189_v48  ;;  %v253_v51 = vmul.f32 %v188_v49, %v188_v49  ;;  %v191_v52 = vld [vmem:[%s2283_s6 + $0xd8] sm:$0xff]  ;;  %v190_v53 = vld [vmem:[%s2283_s6 + $0xd0] sm:$0xff]  ;;  %v193_v56 = vld [vmem:[%s2283_s6 + $0xe8] sm:$0xff]  ;;  %p2093_p0 = por %p2092_p10, %p2091_p8 }
  0x42   : > { %v256_v54 = vmul.f32 %v191_v52, %v191_v52  ;;  %v255_v55 = vmul.f32 %v190_v53, %v190_v53  ;;  %v192_v57 = vld [vmem:[%s2283_s6 + $0xe0] sm:$0xff]  ;;  %v258_v58 = vmul.f32 %v193_v56, %v193_v56  ;;  %v195_v60 = vld [vmem:[%s2283_s6 + $0xf8] sm:$0xff]  ;;  %v194_v61 = vld [vmem:[%s2283_s6 + $0xf0] sm:$0xff] }
  0x43   : > { %303 = vadd.xlane.f32.xlu1 %v234_v10  ;;  %301 = vadd.xlane.f32.xlu0 %v233_v11  ;;  %v257_v59 = vmul.f32 %v192_v57, %v192_v57  ;;  %v260_v62 = vmul.f32 %v195_v60, %v195_v60  ;;  %v259_v63 = vmul.f32 %v194_v61, %v194_v61  ;;  %v197_v3 = vld [vmem:[%s2283_s6 + $0x108] sm:$0xff]  ;;  %v196_v4 = vld [vmem:[%s2283_s6 + $0x100] sm:$0xff]  ;;  %v199_v10 = vld [vmem:[%s2283_s6 + $0x118] sm:$0xff]  ;;  %p2094_p2 = pnand %p2093_p0, %p2087_p13 }
  0x44   : > { %v262_v6 = vmul.f32 %v197_v3, %v197_v3  ;;  %v261_v7 = vmul.f32 %v196_v4, %v196_v4  ;;  %v198_v11 = vld [vmem:[%s2283_s6 + $0x110] sm:$0xff]  ;;  %v203_v24 = vld [vmem:[%s2283_s6 + $0x138] sm:$0xff]  ;;  %v205_v28 = vld [vmem:[%s2283_s6 + $0x148] sm:$0xff] }
  0x45   : > { %v202_v25 = vld [vmem:[%s2283_s6 + $0x130] sm:$0xff]  ;;  %v204_v29 = vld [vmem:[%s2283_s6 + $0x140] sm:$0xff]  ;;  %v207_v32 = vld [vmem:[%s2283_s6 + $0x158] sm:$0xff] }
  0x46   : > { %v206_v33 = vld [vmem:[%s2283_s6 + $0x150] sm:$0xff]  ;;  %v209_v36 = vld [vmem:[%s2283_s6 + $0x168] sm:$0xff]  ;;  %v208_v37 = vld [vmem:[%s2283_s6 + $0x160] sm:$0xff] }
  0x47   : > { %307 = vadd.xlane.f32.xlu1 %v236_v14  ;;  %305 = vadd.xlane.f32.xlu0 %v235_v15  ;;  %v264_v14 = vmul.f32 %v199_v10, %v199_v10  ;;  %v263_v15 = vmul.f32 %v198_v11, %v198_v11  ;;  %v211_v40 = vld [vmem:[%s2283_s6 + $0x178] sm:$0xff]  ;;  %v210_v41 = vld [vmem:[%s2283_s6 + $0x170] sm:$0xff]  ;;  %v213_v44 = vld [vmem:[%s2283_s6 + $0x188] sm:$0xff] }
  0x48   : > { %v212_v45 = vld [vmem:[%s2283_s6 + $0x180] sm:$0xff]  ;;  %v215_v48 = vld [vmem:[%s2283_s6 + $0x198] sm:$0xff]  ;;  %v214_v49 = vld [vmem:[%s2283_s6 + $0x190] sm:$0xff] }
  0x49   : > { %v217_v52 = vld [vmem:[%s2283_s6 + $0x1a8] sm:$0xff]  ;;  %v216_v53 = vld [vmem:[%s2283_s6 + $0x1a0] sm:$0xff]  ;;  %v219_v56 = vld [vmem:[%s2283_s6 + $0x1b8] sm:$0xff] }
  0x4a   : > { %v218_v57 = vld [vmem:[%s2283_s6 + $0x1b0] sm:$0xff]  ;;  %v221_v60 = vld [vmem:[%s2283_s6 + $0x1c8] sm:$0xff]  ;;  %v220_v61 = vld [vmem:[%s2283_s6 + $0x1c0] sm:$0xff] }
  0x4b   : > { %311 = vadd.xlane.f32.xlu1 %v238_v18  ;;  %309 = vadd.xlane.f32.xlu0 %v237_v19  ;;  %v201_v18 = vld [vmem:[%s2283_s6 + $0x128] sm:$0xff]  ;;  %v200_v19 = vld [vmem:[%s2283_s6 + $0x120] sm:$0xff]  ;;  %v223_v3 = vld [vmem:[%s2283_s6 + $0x1d8] sm:$0xff] }
  0x4c   : > { %v222_v4 = vld [vmem:[%s2283_s6 + $0x1d0] sm:$0xff]  ;;  %v225_v10 = vld [vmem:[%s2283_s6 + $0x1e8] sm:$0xff]  ;;  %v224_v11 = vld [vmem:[%s2283_s6 + $0x1e0] sm:$0xff] }
  0x4f   : > { %315 = vadd.xlane.f32.xlu1 %v240_v22  ;;  %313 = vadd.xlane.f32.xlu0 %v239_v23  ;;  %v266_v22 = vmul.f32 %v201_v18, %v201_v18  ;;  %v265_v23 = vmul.f32 %v200_v19, %v200_v19  ;;  %v227_v18 = vld [vmem:[%s2283_s6 + $0x1f8] sm:$0xff]  ;;  %v226_v19 = vld [vmem:[%s2283_s6 + $0x1f0] sm:$0xff] }
  0x53   : > { %319 = vadd.xlane.f32.xlu1 %v242_v26  ;;  %317 = vadd.xlane.f32.xlu0 %v241_v27  ;;  %v268_v26 = vmul.f32 %v203_v24, %v203_v24  ;;  %v267_v27 = vmul.f32 %v202_v25, %v202_v25  ;;  %v291_v24 = vmul.f32 %v226_v19, %v226_v19 }
  0x57   : > { %323 = vadd.xlane.f32.xlu1 %v244_v30  ;;  %321 = vadd.xlane.f32.xlu0 %v243_v31  ;;  %v270_v30 = vmul.f32 %v205_v28, %v205_v28  ;;  %v269_v31 = vmul.f32 %v204_v29, %v204_v29  ;;  %v1196_v28 = vlaneseq }
  0x5b   : > { %327 = vadd.xlane.f32.xlu1 %v246_v34  ;;  %325 = vadd.xlane.f32.xlu0 %v245_v35  ;;  %v272_v34 = vmul.f32 %v207_v32, %v207_v32  ;;  %v271_v35 = vmul.f32 %v206_v33, %v206_v33  ;;  %v1197_v32 = vshrl.u32 %v1196_v28, 7 }
  0x5f   : > { %331 = vadd.xlane.f32.xlu1 %v248_v38  ;;  %329 = vadd.xlane.f32.xlu0 %v247_v39  ;;  %v274_v38 = vmul.f32 %v209_v36, %v209_v36  ;;  %v273_v39 = vmul.f32 %v208_v37, %v208_v37  ;;  %v1198_v36 = vsub.s32 0, %v1197_v32 }
  0x63   : > { %335 = vadd.xlane.f32.xlu1 %v250_v42  ;;  %333 = vadd.xlane.f32.xlu0 %v249_v43  ;;  %v276_v42 = vmul.f32 %v211_v40, %v211_v40  ;;  %v275_v43 = vmul.f32 %v210_v41, %v210_v41 }
  0x67   : > { %339 = vadd.xlane.f32.xlu1 %v252_v46  ;;  %337 = vadd.xlane.f32.xlu0 %v251_v47  ;;  %v278_v46 = vmul.f32 %v213_v44, %v213_v44  ;;  %v277_v47 = vmul.f32 %v212_v45, %v212_v45 }
  0x6b   : > { %343 = vadd.xlane.f32.xlu1 %v254_v50  ;;  %341 = vadd.xlane.f32.xlu0 %v253_v51  ;;  %v280_v50 = vmul.f32 %v215_v48, %v215_v48  ;;  %v279_v51 = vmul.f32 %v214_v49, %v214_v49 }
  0x6f   : > { %347 = vadd.xlane.f32.xlu1 %v256_v54  ;;  %345 = vadd.xlane.f32.xlu0 %v255_v55  ;;  %v282_v54 = vmul.f32 %v217_v52, %v217_v52  ;;  %v281_v55 = vmul.f32 %v216_v53, %v216_v53 }
  0x73   : > { %351 = vadd.xlane.f32.xlu1 %v258_v58  ;;  %349 = vadd.xlane.f32.xlu0 %v257_v59  ;;  %v284_v58 = vmul.f32 %v219_v56, %v219_v56  ;;  %v283_v59 = vmul.f32 %v218_v57, %v218_v57 }
  0x77   : > { %355 = vadd.xlane.f32.xlu1 %v260_v62  ;;  %353 = vadd.xlane.f32.xlu0 %v259_v63  ;;  %v286_v62 = vmul.f32 %v221_v60, %v221_v60  ;;  %v285_v63 = vmul.f32 %v220_v61, %v220_v61 }
  0x7b   : > { %359 = vadd.xlane.f32.xlu1 %v262_v6  ;;  %357 = vadd.xlane.f32.xlu0 %v261_v7  ;;  %v288_v6 = vmul.f32 %v223_v3, %v223_v3  ;;  %v287_v7 = vmul.f32 %v222_v4, %v222_v4 }
  0x7f   : > { %363 = vadd.xlane.f32.xlu1 %v264_v14  ;;  %361 = vadd.xlane.f32.xlu0 %v263_v15  ;;  %v290_v14 = vmul.f32 %v225_v10, %v225_v10  ;;  %v289_v15 = vmul.f32 %v224_v11, %v224_v11 }
  0x83   : > { %367 = vadd.xlane.f32.xlu1 %v266_v22  ;;  %365 = vadd.xlane.f32.xlu0 %v265_v23  ;;  %v228_v22 = vld [vmem:[%s3967_s1] sm:$0x1]  ;;  %v292_v23 = vmul.f32 %v227_v18, %v227_v18 }
  0x84   : > { %vm933_vm0 = vcmp.eq.f32.partialorder %v228_v22, 0.0  ;;  %v2410_v40 = vrot.slane %v228_v22, %v1198_v36 }
  0x85   : > { %v934_v25 = vsel %vm933_vm0, 1.0, %v228_v22 }
  0x86   : > { %1744 = vrcp.f32 %v934_v25 }
  0x87   : > { %371 = vadd.xlane.f32.xlu1 %v268_v26  ;;  %369 = vadd.xlane.f32.xlu0 %v267_v27 }
  0x8b   : > { %375 = vadd.xlane.f32.xlu1 %v270_v30  ;;  %373 = vadd.xlane.f32.xlu0 %v269_v31 }
  0x8f   : > { %379 = vadd.xlane.f32.xlu1 %v272_v34  ;;  %377 = vadd.xlane.f32.xlu0 %v271_v35 }
  0x90   : > { %v1745_v26 = vpop.eup %1744 }
  0x91   : > { %v1192_v27 = vmul.f32 %v1745_v26, %v934_v25 }
  0x93   : > { %383 = vadd.xlane.f32.xlu1 %v274_v38  ;;  %381 = vadd.xlane.f32.xlu0 %v273_v39  ;;  %v1193_v31 = vsub.f32 2.0, %v1192_v27 }
  0x95   : > { %v1194_v35 = vmul.f32 %v1745_v26, %v1193_v31 }
  0x97   : > { %387 = vadd.xlane.f32.xlu1 %v276_v42  ;;  %385 = vadd.xlane.f32.xlu0 %v275_v43  ;;  %v2412_v41 = vrot.slane %v1194_v35, %v1198_v36 }
  0x9b   : > { %391 = vadd.xlane.f32.xlu1 %v278_v46  ;;  %389 = vadd.xlane.f32.xlu0 %v277_v47 }
  0x9f   : > { %395 = vadd.xlane.f32.xlu1 %v280_v50  ;;  %393 = vadd.xlane.f32.xlu0 %v279_v51 }
  0xa3   : > { %399 = vadd.xlane.f32.xlu1 %v282_v54  ;;  %397 = vadd.xlane.f32.xlu0 %v281_v55 }
  0xa7   : > { %403 = vadd.xlane.f32.xlu1 %v284_v58  ;;  %401 = vadd.xlane.f32.xlu0 %v283_v59 }
  0xab   : > { %407 = vadd.xlane.f32.xlu1 %v286_v62  ;;  %405 = vadd.xlane.f32.xlu0 %v285_v63 }
  0xaf   : > { %411 = vadd.xlane.f32.xlu1 %v288_v6  ;;  %409 = vadd.xlane.f32.xlu0 %v287_v7 }
  0xb3   : > { %415 = vadd.xlane.f32.xlu1 %v290_v14  ;;  %413 = vadd.xlane.f32.xlu0 %v289_v15 }
  0xb7   : > { %419 = vadd.xlane.f32.xlu1 %v292_v23  ;;  %417 = vadd.xlane.f32.xlu0 %v291_v24 }
  0xc8   : > { %v298_v29 = vpop.xlane.xlu1 %297  ;;  %v294_v30 = vpop.xlane.xlu0 %293 }
  0xc9   : > { %1746 = vrsqrt.f32 %v298_v29  ;;  %vm437_vm1 = vcmp.eq.f32.partialorder %v298_v29, inf  ;;  %vm439_vm2 = vcmp.eq.f32.partialorder %v298_v29, 0.0  ;;  %v440_v44 = vand.u32 2147483648, %v298_v29 }
  0xca   : > { %1748 = vrsqrt.f32 %v294_v30  ;;  %vm423_vm3 = vcmp.eq.f32.partialorder %v294_v30, inf  ;;  %vm425_vm4 = vcmp.eq.f32.partialorder %v294_v30, 0.0  ;;  %v426_v48 = vand.u32 2147483648, %v294_v30 }
  0xcc   : > { %v300_v33 = vpop.xlane.xlu1 %299  ;;  %v296_v34 = vpop.xlane.xlu0 %295 }
  0xcd   : > { %1750 = vrsqrt.f32 %v300_v33  ;;  %vm444_vm5 = vcmp.eq.f32.partialorder %v300_v33, inf  ;;  %vm446_vm6 = vcmp.eq.f32.partialorder %v300_v33, 0.0  ;;  %v447_v50 = vand.u32 2147483648, %v300_v33 }
  0xce   : > { %1752 = vrsqrt.f32 %v296_v34  ;;  %vm430_vm7 = vcmp.eq.f32.partialorder %v296_v34, inf  ;;  %vm432_vm8 = vcmp.eq.f32.partialorder %v296_v34, 0.0  ;;  %v433_v58 = vand.u32 2147483648, %v296_v34 }
  0xd0   : > { %v2404_v37 = vpop.xlane.xlu1 %303  ;;  %v2406_v38 = vpop.xlane.xlu0 %301 }
  0xd1   : > { %1754 = vrsqrt.f32 %v2404_v37  ;;  %vm458_vm9 = vcmp.eq.f32.partialorder %v2404_v37, inf  ;;  %vm460_vm10 = vcmp.eq.f32.partialorder %v2404_v37, 0.0  ;;  %v461_v63 = vand.u32 2147483648, %v2404_v37 }
  0xd2   : > { %1756 = vrsqrt.f32 %v2406_v38  ;;  %vm451_vm11 = vcmp.eq.f32.partialorder %v2406_v38, inf  ;;  %vm453_vm12 = vcmp.eq.f32.partialorder %v2406_v38, 0.0  ;;  %v454_v19 = vand.u32 2147483648, %v2406_v38 }
  0xd3   : > { %v1747_v39 = vpop.eup %1746 }
  0xd4   : > { %v1749_v42 = vpop.eup %1748  ;;  %v436_v43 = vmul.f32 %v1747_v39, %v298_v29  ;;  %v2414_v45 = vpop.xlane.xlu1 %307 }
  0xd5   : > { %v2416_v46 = vpop.xlane.xlu0 %305  ;;  %v422_v47 = vmul.f32 %v1749_v42, %v294_v30  ;;  %1758 = vrsqrt.f32 %v2414_v45  ;;  %vm472_vm13 = vcmp.eq.f32.partialorder %v2414_v45, inf  ;;  %vm474_vm14 = vcmp.eq.f32.partialorder %v2414_v45, 0.0 }
  0xd6   : > { %v438_v49 = vsel %vm437_vm1, %v298_v29, %v436_v43  ;;  %1760 = vrsqrt.f32 %v2416_v46  ;;  %v475_v23 = vand.u32 2147483648, %v2414_v45  ;;  %vm465_vm15 = vcmp.eq.f32.partialorder %v2416_v46, inf }
  0xd7   : > { %v1751_v51 = vpop.eup %1750  ;;  %v2421_v52 = vsel %vm439_vm2, %v440_v44, %v438_v49  ;;  %v424_v53 = vsel %vm423_vm3, %v294_v30, %v422_v47  ;;  %vm467_vm0 = vcmp.eq.f32.partialorder %v2416_v46, 0.0 }
  0xd8   : > { %v1753_v54 = vpop.eup %1752  ;;  %v871_v55 = vmax.f32 %v2421_v52, 1e-30  ;;  %v2425_v56 = vsel %vm425_vm4, %v426_v48, %v424_v53  ;;  %v443_v57 = vmul.f32 %v1751_v51, %v300_v33  ;;  %v2427_v59 = vpop.xlane.xlu1 %311  ;;  %v2471_v29 = vmul.f32 %v2410_v40, %v2421_v52 }
  0xd9   : > { %v869_v60 = vmax.f32 %v2425_v56, 1e-30  ;;  %v429_v61 = vmul.f32 %v1753_v54, %v296_v34  ;;  %1762 = vrsqrt.f32 %v2427_v59  ;;  %v2457_v24 = vpop.xlane.xlu0 %309  ;;  %v2485_v35 = vmul.f32 %v2410_v40, %v2425_v56 }
  0xda   : > { %1764 = vrcp.f32 %v871_v55  ;;  %v445_v62 = vsel %vm444_vm5, %v300_v33, %v443_v57  ;;  %vm486_vm1 = vcmp.eq.f32.partialorder %v2427_v59, inf  ;;  %vm1267_vm2 = vcmp.gt.f32.partialorder %v2471_v29, 1e-08 }
  0xdb   : > { %v1755_v3 = vpop.eup %1754  ;;  %1766 = vrcp.f32 %v869_v60  ;;  %v2436_v4 = vsel %vm446_vm6, %v447_v50, %v445_v62  ;;  %v431_v6 = vsel %vm430_vm7, %v296_v34, %v429_v61  ;;  %v489_v52 = vand.u32 2147483648, %v2427_v59 }
  0xdc   : > { %v1757_v7 = vpop.eup %1756  ;;  %v872_v10 = vmax.f32 %v2436_v4, 1e-30  ;;  %v2442_v11 = vsel %vm432_vm8, %v433_v58, %v431_v6  ;;  %v457_v14 = vmul.f32 %v1755_v3, %v2404_v37  ;;  %v2506_v44 = vmul.f32 %v2410_v40, %v2436_v4  ;;  %v2522_v56 = vpop.xlane.xlu1 %315 }
  0xdd   : > { %v870_v15 = vmax.f32 %v2442_v11, 1e-30  ;;  %v450_v18 = vmul.f32 %v1757_v7, %v2406_v38  ;;  %vm488_vm3 = vcmp.eq.f32.partialorder %v2427_v59, 0.0  ;;  %vm1265_vm4 = vcmp.gt.f32.partialorder %v2485_v35, 1e-08  ;;  %v2544_v7 = vpop.xlane.xlu0 %313 }
  0xde   : > { %1768 = vrcp.f32 %v872_v10  ;;  %v459_v22 = vsel %vm458_vm9, %v2404_v37, %v457_v14  ;;  %v468_v37 = vand.u32 2147483648, %v2416_v46  ;;  %vm1268_vm5 = vcmp.gt.f32.partialorder %v2506_v44, 1e-08 }
  0xdf   : > { %v1759_v25 = vpop.eup %1758  ;;  %1770 = vrcp.f32 %v870_v15  ;;  %v2463_v26 = vsel %vm460_vm10, %v461_v63, %v459_v22  ;;  %v452_v27 = vsel %vm451_vm11, %v2406_v38, %v450_v18  ;;  %vm479_vm7 = vcmp.eq.f32.partialorder %v2457_v24, inf }
  0xe0   : > { %v1761_v28 = vpop.eup %1760  ;;  %v874_v30 = vmax.f32 %v2463_v26, 1e-30  ;;  %v2476_v31 = vsel %vm453_vm12, %v454_v19, %v452_v27  ;;  %v471_v32 = vmul.f32 %v1759_v25, %v2414_v45  ;;  %1772 = vrsqrt.f32 %v2457_v24 }
  0xe1   : > { %v873_v33 = vmax.f32 %v2476_v31, 1e-30  ;;  %v464_v34 = vmul.f32 %v1761_v28, %v2416_v46  ;;  %vm481_vm8 = vcmp.eq.f32.partialorder %v2457_v24, 0.0 }
  0xe2   : > { %1774 = vrcp.f32 %v874_v30  ;;  %v473_v36 = vsel %vm472_vm13, %v2414_v45, %v471_v32  ;;  %vm500_vm13 = vcmp.eq.f32.partialorder %v2522_v56, inf }
  0xe3   : > { %v1763_v38 = vpop.eup %1762  ;;  %1776 = vrcp.f32 %v873_v33  ;;  %v2497_v39 = vsel %vm474_vm14, %v475_v23, %v473_v36  ;;  %v466_v42 = vsel %vm465_vm15, %v2416_v46, %v464_v34  ;;  %v2514_v46 = vmul.f32 %v2410_v40, %v2442_v11 }
  0xe4   : > { %v1765_v43 = vpop.eup %1764  ;;  %v876_v47 = vmax.f32 %v2497_v39, 1e-30  ;;  %v2509_v48 = vsel %vm467_vm0, %v468_v37, %v466_v42  ;;  %v485_v45 = vmul.f32 %v1763_v38, %v2427_v59  ;;  %v2550_v19 = vmul.f32 %v2410_v40, %v2497_v39  ;;  %v2570_v38 = vpop.xlane.xlu1 %319 }
  0xe5   : > { %v1767_v49 = vpop.eup %1766  ;;  %v1001_v50 = vmul.f32 %v1765_v43, %v871_v55  ;;  %v875_v51 = vmax.f32 %v2509_v48, 1e-30  ;;  %vm1266_vm6 = vcmp.gt.f32.partialorder %v2514_v46, 1e-08  ;;  %v2557_v23 = vmul.f32 %v2410_v40, %v2509_v48 }
  0xe6   : > { %v999_v53 = vmul.f32 %v1767_v49, %v869_v60  ;;  %1778 = vrcp.f32 %v876_v47  ;;  %v487_v54 = vsel %vm486_vm1, %v2427_v59, %v485_v45  ;;  %v2532_v60 = vmul.f32 %v2410_v40, %v2463_v26 }
  0xe7   : > { %v1065_v57 = vsub.f32 2.0, %v1001_v50  ;;  %1780 = vrcp.f32 %v875_v51  ;;  %v2527_v55 = vsel %vm488_vm3, %v489_v52, %v487_v54  ;;  %v2536_v59 = vmul.f32 %v2410_v40, %v2476_v31 }
  0xe8   : > { %v1769_v58 = vpop.eup %1768  ;;  %v1063_v61 = vsub.f32 2.0, %v999_v53  ;;  %v878_v62 = vmax.f32 %v2527_v55, 1e-30  ;;  %1782 = vrsqrt.f32 %v2522_v56  ;;  %vm1270_vm9 = vcmp.gt.f32.partialorder %v2532_v60, 1e-08 }
  0xe9   : > { %v1771_v63 = vpop.eup %1770  ;;  %v1129_v3 = vmul.f32 %v1765_v43, %v1065_v57  ;;  %v1002_v6 = vmul.f32 %v1769_v58, %v872_v10  ;;  %vm1269_vm10 = vcmp.gt.f32.partialorder %v2536_v59, 1e-08  ;;  %v482_v37 = vand.u32 2147483648, %v2457_v24 }
  0xea   : > { %v1127_v14 = vmul.f32 %v1767_v49, %v1063_v61  ;;  %v1000_v18 = vmul.f32 %v1771_v63, %v870_v15  ;;  %1784 = vrcp.f32 %v878_v62  ;;  %v1773_v4 = vpop.eup %1772  ;;  %vm1272_vm11 = vcmp.gt.f32.partialorder %v2550_v19, 1e-08  ;;  %v2604_v61 = vpop.xlane.xlu0 %317 }
  0xeb   : > { %v1337_v10 = vmul.f32 %v2412_v41, %v1129_v3  ;;  %v1066_v22 = vsub.f32 2.0, %v1002_v6  ;;  %v478_v27 = vmul.f32 %v1773_v4, %v2457_v24  ;;  %1786 = vrsqrt.f32 %v2544_v7 }
  0xec   : > { %v1775_v25 = vpop.eup %1774  ;;  %v1335_v11 = vmul.f32 %v2412_v41, %v1127_v14  ;;  %v1064_v15 = vsub.f32 2.0, %v1000_v18  ;;  %vm1271_vm12 = vcmp.gt.f32.partialorder %v2557_v23, 1e-08  ;;  %v2615_v18 = vpop.xlane.xlu1 %323  ;;  %vm502_vm14 = vcmp.eq.f32.partialorder %v2522_v56, 0.0 }
  0xed   : > { %v1777_v28 = vpop.eup %1776  ;;  %v1401_v32 = vsel %vm1267_vm2, %v1337_v10, 1e+08  ;;  %v1130_v34 = vmul.f32 %v1769_v58, %v1066_v22  ;;  %v1004_v36 = vmul.f32 %v1775_v25, %v874_v30  ;;  %v480_v50 = vsel %vm479_vm7, %v2457_v24, %v478_v27 }
  0xee   : > { %v1465_v42 = vmul.f32 %v1401_v32, %v2290_v0  ;;  %v1399_v43 = vsel %vm1265_vm4, %v1335_v11, 1e+08  ;;  %v1128_v45 = vmul.f32 %v1771_v63, %v1064_v15  ;;  %v1003_v29 = vmul.f32 %v1777_v28, %v873_v33 }
  0xef   : > { %v1463_v49 = vmul.f32 %v1399_v43, %v2293_v1  ;;  %v1338_v26 = vmul.f32 %v2412_v41, %v1130_v34  ;;  %v1068_v30 = vsub.f32 2.0, %v1004_v36  ;;  %v2591_v1 = vmul.f32 %v2410_v40, %v2527_v55 }
  0xf0   : > { %v1779_v52 = vpop.eup %1778  ;;  %1529 = vst [vmem:[%s2584_s30 + $0x10] sm:$0xff] %v1465_v42  ;;  %v1336_v0 = vmul.f32 %v2412_v41, %v1128_v45  ;;  %v1067_v31 = vsub.f32 2.0, %v1003_v29  ;;  %v2595_v33 = vsel %vm481_vm8, %v482_v37, %v480_v50  ;;  %v503_v27 = vand.u32 2147483648, %v2522_v56 }
  0xf1   : > { %v1781_v35 = vpop.eup %1780  ;;  %1527 = vst [vmem:[%s2584_s30] sm:$0xff] %v1463_v49  ;;  %v1402_v53 = vsel %vm1268_vm5, %v1338_v26, 1e+08  ;;  %v1132_v54 = vmul.f32 %v1775_v25, %v1068_v30  ;;  %v1006_v57 = vmul.f32 %v1779_v52, %v876_v47  ;;  %v877_v58 = vmax.f32 %v2595_v33, 1e-30 }
  0xf2   : > { %v1466_v24 = vmul.f32 %v1402_v53, %v2296_v2  ;;  %v1400_v63 = vsel %vm1266_vm6, %v1336_v0, 1e+08  ;;  %v1131_v3 = vmul.f32 %v1777_v28, %v1067_v31  ;;  %v1005_v44 = vmul.f32 %v1781_v35, %v875_v51  ;;  %v1783_v6 = vpop.eup %1782 }
  0xf3   : > { %v1464_v39 = vmul.f32 %v1400_v63, %v2303_v5  ;;  %v1340_v47 = vmul.f32 %v2412_v41, %v1132_v54  ;;  %v1070_v14 = vsub.f32 2.0, %v1006_v57  ;;  %1788 = vrcp.f32 %v877_v58 }
  0xf4   : > { %v1785_v2 = vpop.eup %1784  ;;  %1530 = vst [vmem:[%s2584_s30 + $0x18] sm:$0xff] %v1466_v24  ;;  %v1339_v46 = vmul.f32 %v2412_v41, %v1131_v3  ;;  %v1069_v4 = vsub.f32 2.0, %v1005_v44  ;;  %v499_v10 = vmul.f32 %v1783_v6, %v2522_v56  ;;  %1790 = vrsqrt.f32 %v2570_v38 }
  0xf5   : > { %1528 = vst [vmem:[%s2584_s30 + $0x8] sm:$0xff] %v1464_v39  ;;  %v1404_v5 = vsel %vm1270_vm9, %v1340_v47, 1e+08  ;;  %v1134_v48 = vmul.f32 %v1779_v52, %v1070_v14  ;;  %v1008_v51 = vmul.f32 %v1785_v2, %v878_v62  ;;  %v1787_v22 = vpop.eup %1786  ;;  %v2634_v62 = vpop.xlane.xlu0 %321  ;;  %vm493_vm15 = vcmp.eq.f32.partialorder %v2544_v7, inf }
  0xf6   : > { %v1468_v25 = vmul.f32 %v1404_v5, %v2310_v8  ;;  %v1403_v11 = vsel %vm1269_vm10, %v1339_v46, 1e+08  ;;  %v1133_v15 = vmul.f32 %v1781_v35, %v1069_v4  ;;  %v501_v55 = vsel %vm500_vm13, %v2522_v56, %v499_v10  ;;  %v2644_v56 = vpop.xlane.xlu1 %327 }
  0xf7   : > { %v1467_v28 = vmul.f32 %v1403_v11, %v2313_v9  ;;  %v1342_v60 = vmul.f32 %v2412_v41, %v1134_v48  ;;  %v1072_v32 = vsub.f32 2.0, %v1008_v51  ;;  %v504_v36 = vsel %vm502_vm14, %v503_v27, %v501_v55 }
  0xf8   : > { %1532 = vst [vmem:[%s2584_s30 + $0x28] sm:$0xff] %v1468_v25  ;;  %v1341_v34 = vmul.f32 %v2412_v41, %v1133_v15  ;;  %v492_v8 = vmul.f32 %v1787_v22, %v2544_v7  ;;  %v880_v37 = vmax.f32 %v504_v36, 1e-30  ;;  %v496_v29 = vand.u32 2147483648, %v2544_v7 }
  0xf9   : > { %1531 = vst [vmem:[%s2584_s30 + $0x20] sm:$0xff] %v1467_v28  ;;  %v1406_v9 = vsel %vm1272_vm11, %v1342_v60, 1e+08  ;;  %v1136_v59 = vmul.f32 %v1785_v2, %v1072_v32  ;;  %vm495_vm0 = vcmp.eq.f32.partialorder %v2544_v7, 0.0  ;;  %vm1274_vm1 = vcmp.gt.f32.partialorder %v2591_v1, 1e-08  ;;  %v2663_v50 = vpop.xlane.xlu0 %325 }
  0xfa   : > { %v1470_v42 = vmul.f32 %v1406_v9, %v2320_v12  ;;  %v1405_v43 = vsel %vm1271_vm12, %v1341_v34, 1e+08  ;;  %v494_v45 = vsel %vm493_vm15, %v2544_v7, %v492_v8  ;;  %1792 = vrcp.f32 %v880_v37  ;;  %v2668_v0 = vpop.xlane.xlu1 %331 }
  0xfb   : > { %v1469_v49 = vmul.f32 %v1405_v43, %v2323_v13  ;;  %v1344_v19 = vmul.f32 %v2412_v41, %v1136_v59  ;;  %v2656_v26 = vsel %vm495_vm0, %v496_v29, %v494_v45  ;;  %1794 = vrsqrt.f32 %v2604_v61 }
  0xfc   : > { %1534 = vst [vmem:[%s2584_s30 + $0x38] sm:$0xff] %v1470_v42  ;;  %v1209_v30 = vmul.f32 %v2410_v40, %v2595_v33  ;;  %v879_v13 = vmax.f32 %v2656_v26, 1e-30  ;;  %v2673_v1 = vmul.f32 %v2410_v40, %v504_v36  ;;  %vm514_vm3 = vcmp.eq.f32.partialorder %v2570_v38, inf }
  0xfd   : > { %v1789_v12 = vpop.eup %1788  ;;  %1533 = vst [vmem:[%s2584_s30 + $0x30] sm:$0xff] %v1469_v49  ;;  %v1408_v23 = vsel %vm1274_vm1, %v1344_v19, 1e+08  ;;  %vm516_vm4 = vcmp.eq.f32.partialorder %v2570_v38, 0.0  ;;  %v517_v33 = vand.u32 2147483648, %v2570_v38  ;;  %v2682_v53 = vmul.f32 %v2410_v40, %v2656_v26  ;;  %v2687_v57 = vpop.xlane.xlu0 %329 }
  0xfe   : > { %v1472_v52 = vmul.f32 %v1408_v23, %v2330_v16  ;;  %v1007_v7 = vmul.f32 %v1789_v12, %v877_v58  ;;  %1796 = vrcp.f32 %v879_v13  ;;  %vm1273_vm2 = vcmp.gt.f32.partialorder %v1209_v30, 1e-08  ;;  %v1791_v35 = vpop.eup %1790  ;;  %v2700_v6 = vpop.xlane.xlu1 %335 }
  0xff   : > { %1798 = vrsqrt.f32 %v2615_v18  ;;  %v513_v54 = vmul.f32 %v1791_v35, %v2570_v38  ;;  %vm507_vm5 = vcmp.eq.f32.partialorder %v2604_v61, inf  ;;  %vm509_vm6 = vcmp.eq.f32.partialorder %v2604_v61, 0.0 }
 0x100   : > { %1536 = vst [vmem:[%s2584_s30 + $0x48] sm:$0xff] %v1472_v52  ;;  %v1071_v31 = vsub.f32 2.0, %v1007_v7  ;;  %1800 = vrsqrt.f32 %v2634_v62  ;;  %v510_v24 = vand.u32 2147483648, %v2604_v61  ;;  %vm528_vm7 = vcmp.eq.f32.partialorder %v2615_v18, inf }
 0x101   : > { %1802 = vrsqrt.f32 %v2644_v56  ;;  %vm1276_vm8 = vcmp.gt.f32.partialorder %v2673_v1, 1e-08  ;;  %v515_v3 = vsel %vm514_vm3, %v2570_v38, %v513_v54  ;;  %vm530_vm9 = vcmp.eq.f32.partialorder %v2615_v18, 0.0  ;;  %v2725_v22 = vpop.xlane.xlu0 %333 }
 0x102   : > { %v1135_v16 = vmul.f32 %v1789_v12, %v1071_v31  ;;  %1804 = vrsqrt.f32 %v2663_v50  ;;  %v531_v44 = vand.u32 2147483648, %v2615_v18  ;;  %vm521_vm10 = vcmp.eq.f32.partialorder %v2634_v62, inf }
 0x103   : > { %v2705_v2 = vsel %vm516_vm4, %v517_v33, %v515_v3  ;;  %vm523_vm11 = vcmp.eq.f32.partialorder %v2634_v62, 0.0  ;;  %1806 = vrsqrt.f32 %v2668_v0  ;;  %v524_v48 = vand.u32 2147483648, %v2634_v62 }
 0x104   : > { %v1343_v58 = vmul.f32 %v2412_v41, %v1135_v16  ;;  %v1793_v63 = vpop.eup %1792  ;;  %v882_v4 = vmax.f32 %v2705_v2, 1e-30  ;;  %1808 = vrsqrt.f32 %v2687_v57  ;;  %vm542_vm12 = vcmp.eq.f32.partialorder %v2644_v56, inf }
 0x105   : > { %v1795_v39 = vpop.eup %1794  ;;  %v1010_v14 = vmul.f32 %v1793_v63, %v880_v37  ;;  %1810 = vrsqrt.f32 %v2700_v6  ;;  %vm1275_vm13 = vcmp.gt.f32.partialorder %v2682_v53, 1e-08  ;;  %vm544_vm14 = vcmp.eq.f32.partialorder %v2644_v56, 0.0 }
 0x106   : > { %v1407_v47 = vsel %vm1273_vm2, %v1343_v58, 1e+08  ;;  %v506_v10 = vmul.f32 %v1795_v39, %v2604_v61  ;;  %1812 = vrcp.f32 %v882_v4  ;;  %v545_v51 = vand.u32 2147483648, %v2644_v56 }
 0x107   : > { %v1471_v46 = vmul.f32 %v1407_v47, %v2333_v17  ;;  %v1074_v5 = vsub.f32 2.0, %v1010_v14  ;;  %vm535_vm15 = vcmp.eq.f32.partialorder %v2663_v50, inf  ;;  %vm537_vm0 = vcmp.eq.f32.partialorder %v2663_v50, 0.0 }
 0x108   : > { %v1797_v38 = vpop.eup %1796  ;;  %v508_v17 = vsel %vm507_vm5, %v2604_v61, %v506_v10  ;;  %v538_v55 = vand.u32 2147483648, %v2663_v50  ;;  %vm556_vm1 = vcmp.eq.f32.partialorder %v2668_v0, inf  ;;  %1814 = vrsqrt.f32 %v2725_v22 }
 0x109   : > { %1535 = vst [vmem:[%s2584_s30 + $0x40] sm:$0xff] %v1471_v46  ;;  %v1799_v25 = vpop.eup %1798  ;;  %v1138_v11 = vmul.f32 %v1793_v63, %v1074_v5  ;;  %v1009_v15 = vmul.f32 %v1797_v38, %v879_v13  ;;  %v2729_v27 = vsel %vm509_vm6, %v510_v24, %v508_v17  ;;  %vm558_vm2 = vcmp.eq.f32.partialorder %v2668_v0, 0.0 }
 0x10a   : > { %v1801_v28 = vpop.eup %1800  ;;  %v881_v60 = vmax.f32 %v2729_v27, 1e-30  ;;  %v527_v32 = vmul.f32 %v1799_v25, %v2615_v18  ;;  %v559_v37 = vand.u32 2147483648, %v2668_v0  ;;  %v2760_v26 = vmul.f32 %v2410_v40, %v2705_v2 }
 0x10b   : > { %v1803_v34 = vpop.eup %1802  ;;  %v1346_v36 = vmul.f32 %v2412_v41, %v1138_v11  ;;  %v1073_v8 = vsub.f32 2.0, %v1009_v15  ;;  %v520_v9 = vmul.f32 %v1801_v28, %v2634_v62  ;;  %vm549_vm3 = vcmp.eq.f32.partialorder %v2687_v57, inf }
 0x10c   : > { %1816 = vrcp.f32 %v881_v60  ;;  %v529_v61 = vsel %vm528_vm7, %v2615_v18, %v527_v32  ;;  %v541_v59 = vmul.f32 %v1803_v34, %v2644_v56  ;;  %v1805_v42 = vpop.eup %1804  ;;  %vm551_vm4 = vcmp.eq.f32.partialorder %v2687_v57, 0.0 }
 0x10d   : > { %v1410_v43 = vsel %vm1276_vm8, %v1346_v36, 1e+08  ;;  %v1137_v45 = vmul.f32 %v1797_v38, %v1073_v8  ;;  %v2752_v29 = vsel %vm530_vm9, %v531_v44, %v529_v61  ;;  %v522_v49 = vsel %vm521_vm10, %v2634_v62, %v520_v9  ;;  %v1807_v30 = vpop.eup %1806  ;;  %v2859_v8 = vpop.xlane.xlu1 %339  ;;  %v2002_v9 = vld [vmem:[%s2283_s6 + $0x68] sm:$0xff] }
 0x10e   : > { %v1474_v19 = vmul.f32 %v1410_v43, %v2340_v20  ;;  %v884_v12 = vmax.f32 %v2752_v29, 1e-30  ;;  %v2765_v23 = vsel %vm523_vm11, %v524_v48, %v522_v49  ;;  %v543_v52 = vsel %vm542_vm12, %v2644_v56, %v541_v59  ;;  %v1809_v20 = vpop.eup %1808 }
 0x10f   : > { %v1345_v18 = vmul.f32 %v2412_v41, %v1137_v45  ;;  %v883_v13 = vmax.f32 %v2765_v23, 1e-30  ;;  %v2778_v62 = vsel %vm544_vm14, %v545_v51, %v543_v52  ;;  %v534_v7 = vmul.f32 %v1805_v42, %v2663_v50  ;;  %v1811_v31 = vpop.eup %1810 }
 0x110   : > { %1538 = vst [vmem:[%s2584_s30 + $0x58] sm:$0xff] %v1474_v19  ;;  %1818 = vrcp.f32 %v884_v12  ;;  %v886_v35 = vmax.f32 %v2778_v62, 1e-30  ;;  %v552_v16 = vand.u32 2147483648, %v2687_v57  ;;  %v1813_v33 = vpop.eup %1812  ;;  %vm1278_vm5 = vcmp.gt.f32.partialorder %v2760_v26, 1e-08 }
 0x111   : > { %v1409_v1 = vsel %vm1275_vm13, %v1345_v18, 1e+08  ;;  %1820 = vrcp.f32 %v883_v13  ;;  %v536_v54 = vsel %vm535_vm15, %v2663_v50, %v534_v7  ;;  %v555_v58 = vmul.f32 %v1807_v30, %v2668_v0  ;;  %v2877_v30 = vpop.xlane.xlu0 %337 }
 0x112   : > { %v1473_v56 = vmul.f32 %v1409_v1, %v2343_v21  ;;  %vm570_vm6 = vcmp.eq.f32.partialorder %v2700_v6, inf  ;;  %v1012_v53 = vmul.f32 %v1813_v33, %v882_v4  ;;  %1822 = vrcp.f32 %v886_v35  ;;  %v1815_v47 = vpop.eup %1814 }
 0x113   : > { %v2799_v24 = vsel %vm537_vm0, %v538_v55, %v536_v54  ;;  %v548_v21 = vmul.f32 %v1809_v20, %v2687_v57  ;;  %v1213_v63 = vmul.f32 %v2410_v40, %v2729_v27  ;;  %v557_v44 = vsel %vm556_vm1, %v2668_v0, %v555_v58  ;;  %v2893_v58 = vpop.xlane.xlu1 %343 }
 0x114   : > { %1537 = vst [vmem:[%s2584_s30 + $0x50] sm:$0xff] %v1473_v56  ;;  %v885_v3 = vmax.f32 %v2799_v24, 1e-30  ;;  %v573_v39 = vand.u32 2147483648, %v2700_v6  ;;  %v1076_v14 = vsub.f32 2.0, %v1012_v53  ;;  %v2812_v50 = vsel %vm558_vm2, %v559_v37, %v557_v44 }
 0x115   : > { %v550_v2 = vsel %vm549_vm3, %v2687_v57, %v548_v21  ;;  %v569_v46 = vmul.f32 %v1811_v31, %v2700_v6  ;;  %v2820_v10 = vmul.f32 %v2410_v40, %v2752_v29  ;;  %v2824_v5 = vmul.f32 %v2410_v40, %v2765_v23 }
 0x116   : > { %v1817_v4 = vpop.eup %1816  ;;  %1824 = vrcp.f32 %v885_v3  ;;  %v888_v0 = vmax.f32 %v2812_v50, 1e-30  ;;  %v1140_v48 = vmul.f32 %v1813_v33, %v1076_v14  ;;  %v2833_v17 = vsel %vm551_vm4, %v552_v16, %v550_v2  ;;  %v2005_v14 = vld [vmem:[%s2283_s6 + $0x70] sm:$0xff] }
 0x117   : > { %v1011_v38 = vmul.f32 %v1817_v4, %v881_v60  ;;  %v571_v51 = vsel %vm570_vm6, %v2700_v6, %v569_v46  ;;  %v2840_v25 = vmul.f32 %v2410_v40, %v2778_v62  ;;  %v887_v11 = vmax.f32 %v2833_v17, 1e-30 }
 0x118   : > { %1826 = vrcp.f32 %v888_v0  ;;  %vm572_vm7 = vcmp.eq.f32.partialorder %v2700_v6, 0.0  ;;  %v1348_v57 = vmul.f32 %v2412_v41, %v1140_v48  ;;  %v562_v28 = vmul.f32 %v1815_v47, %v2725_v22 }
 0x119   : > { %v1075_v15 = vsub.f32 2.0, %v1011_v38  ;;  %v2847_v27 = vsel %vm572_vm7, %v573_v39, %v571_v51  ;;  %vm1277_vm8 = vcmp.gt.f32.partialorder %v1213_v63, 1e-08  ;;  %vm1280_vm9 = vcmp.gt.f32.partialorder %v2820_v10, 1e-08 }
 0x11a   : > { %v1819_v60 = vpop.eup %1818  ;;  %1828 = vrcp.f32 %v887_v11  ;;  %v890_v32 = vmax.f32 %v2847_v27, 1e-30  ;;  %v1412_v6 = vsel %vm1278_vm5, %v1348_v57, 1e+08  ;;  %vm1279_vm10 = vcmp.gt.f32.partialorder %v2824_v5, 1e-08 }
 0x11b   : > { %v1821_v55 = vpop.eup %1820  ;;  %v1139_v34 = vmul.f32 %v1817_v4, %v1075_v15  ;;  %v1014_v36 = vmul.f32 %v1819_v60, %v884_v12  ;;  %v1476_v61 = vmul.f32 %v2002_v9, %v1412_v6  ;;  %vm563_vm11 = vcmp.eq.f32.partialorder %v2725_v22, inf  ;;  %v2006_v5 = vld [vmem:[%s2283_s6 + $0x88] sm:$0xff]  ;;  %v2914_v15 = vpop.xlane.xlu0 %341 }
 0x11c   : > { %v1013_v59 = vmul.f32 %v1821_v55, %v883_v13  ;;  %1830 = vrcp.f32 %v890_v32  ;;  %v1823_v37 = vpop.eup %1822  ;;  %vm1282_vm12 = vcmp.gt.f32.partialorder %v2840_v25, 1e-08  ;;  %v564_v45 = vsel %vm563_vm11, %v2725_v22, %v562_v28  ;;  %v2003_v13 = vld [vmem:[%s2283_s6 + $0x60] sm:$0xff]  ;;  %v2922_v28 = vpop.xlane.xlu1 %347 }
 0x11d   : > { %v1347_v42 = vmul.f32 %v2412_v41, %v1139_v34  ;;  %v1078_v43 = vsub.f32 2.0, %v1014_v36  ;;  %1540 = vst [vmem:[%s2584_s30 + $0x68] sm:$0xff] %v1476_v61  ;;  %v1016_v49 = vmul.f32 %v1823_v37, %v886_v35  ;;  %v566_v19 = vand.u32 2147483648, %v2725_v22 }
 0x11e   : > { %v1077_v29 = vsub.f32 2.0, %v1013_v59  ;;  %1832 = vrsqrt.f32 %v2859_v8  ;;  %v1217_v23 = vmul.f32 %v2410_v40, %v2799_v24  ;;  %vm565_vm13 = vcmp.eq.f32.partialorder %v2725_v22, 0.0 }
 0x11f   : > { %v1411_v26 = vsel %vm1277_vm8, %v1347_v42, 1e+08  ;;  %v1142_v12 = vmul.f32 %v1819_v60, %v1078_v43  ;;  %v1080_v62 = vsub.f32 2.0, %v1016_v49  ;;  %v2880_v7 = vsel %vm565_vm13, %v566_v19, %v564_v45  ;;  %v2008_v43 = vld [vmem:[%s2283_s6 + $0x98] sm:$0xff] }
 0x120   : > { %v1825_v18 = vpop.eup %1824  ;;  %v1475_v52 = vmul.f32 %v2003_v13, %v1411_v26  ;;  %v1141_v20 = vmul.f32 %v1821_v55, %v1077_v29  ;;  %v1220_v35 = vmul.f32 %v2410_v40, %v2812_v50  ;;  %v889_v22 = vmax.f32 %v2880_v7, 1e-30 }
 0x121   : > { %v1350_v31 = vmul.f32 %v2412_v41, %v1142_v12  ;;  %v1015_v1 = vmul.f32 %v1825_v18, %v885_v3  ;;  %v1144_v56 = vmul.f32 %v1823_v37, %v1080_v62  ;;  %v1219_v54 = vmul.f32 %v2410_v40, %v2833_v17  ;;  %v2004_v3 = vld [vmem:[%s2283_s6 + $0x78] sm:$0xff] }
 0x122   : > { %v1827_v16 = vpop.eup %1826  ;;  %1539 = vst [vmem:[%s2584_s30 + $0x60] sm:$0xff] %v1475_v52  ;;  %v1349_v33 = vmul.f32 %v2412_v41, %v1141_v20  ;;  %1834 = vrsqrt.f32 %v2877_v30  ;;  %vm1281_vm14 = vcmp.gt.f32.partialorder %v1217_v23, 1e-08  ;;  %vm1284_vm15 = vcmp.gt.f32.partialorder %v1220_v35, 1e-08 }
 0x123   : > { %v1414_v53 = vsel %vm1280_vm9, %v1350_v31, 1e+08  ;;  %v1079_v24 = vsub.f32 2.0, %v1015_v1  ;;  %v1018_v21 = vmul.f32 %v1827_v16, %v888_v0  ;;  %1836 = vrcp.f32 %v889_v22  ;;  %v2951_v31 = vpop.xlane.xlu1 %351 }
 0x124   : > { %v1829_v63 = vpop.eup %1828  ;;  %v1478_v44 = vmul.f32 %v2004_v3, %v1414_v53  ;;  %v1413_v39 = vsel %vm1279_vm10, %v1349_v33, 1e+08  ;;  %v1352_v47 = vmul.f32 %v2412_v41, %v1144_v56  ;;  %vm1283_vm0 = vcmp.gt.f32.partialorder %v1219_v54, 1e-08  ;;  %v2010_v56 = vld [vmem:[%s2283_s6 + $0xa8] sm:$0xff] }
 0x125   : > { %v1477_v2 = vmul.f32 %v2005_v14, %v1413_v39  ;;  %v1143_v46 = vmul.f32 %v1825_v18, %v1079_v24  ;;  %v1082_v4 = vsub.f32 2.0, %v1018_v21  ;;  %v1017_v50 = vmul.f32 %v1829_v63, %v887_v11  ;;  %v2943_v18 = vpop.xlane.xlu0 %345 }
 0x126   : > { %v1831_v10 = vpop.eup %1830  ;;  %1542 = vst [vmem:[%s2584_s30 + $0x78] sm:$0xff] %v1478_v44  ;;  %v1416_v0 = vsel %vm1282_vm12, %v1352_v47, 1e+08  ;;  %v1222_v25 = vmul.f32 %v2410_v40, %v2847_v27  ;;  %vm584_vm1 = vcmp.eq.f32.partialorder %v2859_v8, inf  ;;  %1838 = vrsqrt.f32 %v2893_v58 }
 0x127   : > { %1541 = vst [vmem:[%s2584_s30 + $0x70] sm:$0xff] %v1477_v2  ;;  %v1480_v48 = vmul.f32 %v2006_v5, %v1416_v0  ;;  %v1351_v38 = vmul.f32 %v2412_v41, %v1143_v46  ;;  %v1146_v51 = vmul.f32 %v1827_v16, %v1082_v4  ;;  %v1081_v57 = vsub.f32 2.0, %v1017_v50  ;;  %v2978_v39 = vpop.xlane.xlu1 %355 }
 0x128   : > { %v1833_v17 = vpop.eup %1832  ;;  %v1020_v11 = vmul.f32 %v1831_v10, %v890_v32  ;;  %v2007_v32 = vld [vmem:[%s2283_s6 + $0x80] sm:$0xff]  ;;  %v587_v27 = vand.u32 2147483648, %v2859_v8  ;;  %1840 = vrsqrt.f32 %v2914_v15  ;;  %vm586_vm2 = vcmp.eq.f32.partialorder %v2859_v8, 0.0 }
 0x129   : > { %1544 = vst [vmem:[%s2584_s30 + $0x88] sm:$0xff] %v1480_v48  ;;  %v1415_v60 = vsel %vm1281_vm14, %v1351_v38, 1e+08  ;;  %v1354_v55 = vmul.f32 %v2412_v41, %v1146_v51  ;;  %v1145_v6 = vmul.f32 %v1829_v63, %v1081_v57  ;;  %v583_v34 = vmul.f32 %v1833_v17, %v2859_v8  ;;  %v2972_v21 = vpop.xlane.xlu0 %349 }
 0x12a   : > { %v1479_v36 = vmul.f32 %v2007_v32, %v1415_v60  ;;  %v1084_v9 = vsub.f32 2.0, %v1020_v11  ;;  %vm1286_vm3 = vcmp.gt.f32.partialorder %v1222_v25, 1e-08  ;;  %vm577_vm4 = vcmp.eq.f32.partialorder %v2877_v30, inf }
 0x12b   : > { %v1418_v61 = vsel %vm1284_vm15, %v1354_v55, 1e+08  ;;  %v1353_v59 = vmul.f32 %v2412_v41, %v1145_v6  ;;  %v585_v37 = vsel %vm584_vm1, %v2859_v8, %v583_v34  ;;  %v2009_v8 = vld [vmem:[%s2283_s6 + $0x90] sm:$0xff]  ;;  %v580_v62 = vand.u32 2147483648, %v2877_v30  ;;  %v3017_v55 = vpop.xlane.xlu1 %359 }
 0x12c   : > { %v1835_v42 = vpop.eup %1834  ;;  %1543 = vst [vmem:[%s2584_s30 + $0x80] sm:$0xff] %v1479_v36  ;;  %v1482_v45 = vmul.f32 %v2008_v43, %v1418_v61  ;;  %v1148_v29 = vmul.f32 %v1831_v10, %v1084_v9  ;;  %v2937_v49 = vsel %vm586_vm2, %v587_v27, %v585_v37  ;;  %v1221_v1 = vmul.f32 %v2410_v40, %v2880_v7  ;;  %v2011_v10 = vld [vmem:[%s2283_s6 + $0xa0] sm:$0xff] }
 0x12d   : > { %v1837_v19 = vpop.eup %1836  ;;  %v1417_v26 = vsel %vm1283_vm0, %v1353_v59, 1e+08  ;;  %v892_v12 = vmax.f32 %v2937_v49, 1e-30  ;;  %v576_v23 = vmul.f32 %v1835_v42, %v2877_v30  ;;  %vm579_vm5 = vcmp.eq.f32.partialorder %v2877_v30, 0.0  ;;  %v3010_v17 = vpop.xlane.xlu0 %353 }
 0x12e   : > { %1546 = vst [vmem:[%s2584_s30 + $0x98] sm:$0xff] %v1482_v45  ;;  %v1481_v13 = vmul.f32 %v2009_v8, %v1417_v26  ;;  %v1356_v52 = vmul.f32 %v2412_v41, %v1148_v29  ;;  %v1019_v20 = vmul.f32 %v1837_v19, %v889_v22  ;;  %vm1285_vm6 = vcmp.gt.f32.partialorder %v1221_v1, 1e-08 }
 0x12f   : > { %1842 = vrcp.f32 %v892_v12  ;;  %v578_v35 = vsel %vm577_vm4, %v2877_v30, %v576_v23  ;;  %vm598_vm7 = vcmp.eq.f32.partialorder %v2893_v58, inf  ;;  %vm600_vm8 = vcmp.eq.f32.partialorder %v2893_v58, 0.0 }
 0x130   : > { %1545 = vst [vmem:[%s2584_s30 + $0x90] sm:$0xff] %v1481_v13  ;;  %v1420_v16 = vsel %vm1286_vm3, %v1356_v52, 1e+08  ;;  %v1083_v33 = vsub.f32 2.0, %v1019_v20  ;;  %v2961_v22 = vsel %vm579_vm5, %v580_v62, %v578_v35  ;;  %1844 = vrsqrt.f32 %v2922_v28  ;;  %v1839_v7 = vpop.eup %1838 }
 0x131   : > { %v1484_v54 = vmul.f32 %v2010_v56, %v1420_v16  ;;  %v891_v53 = vmax.f32 %v2961_v22, 1e-30  ;;  %1846 = vrsqrt.f32 %v2943_v18  ;;  %v597_v30 = vmul.f32 %v1839_v7, %v2893_v58  ;;  %v2012_v56 = vld [vmem:[%s2283_s6 + $0xb8] sm:$0xff] }
 0x132   : > { %v1147_v24 = vmul.f32 %v1837_v19, %v1083_v33  ;;  %v1841_v63 = vpop.eup %1840  ;;  %v601_v44 = vand.u32 2147483648, %v2893_v58  ;;  %v2982_v47 = vmul.f32 %v2410_v40, %v2937_v49  ;;  %vm591_vm9 = vcmp.eq.f32.partialorder %v2914_v15, inf  ;;  %v3071_v33 = vpop.xlane.xlu0 %357 }
 0x133   : > { %1548 = vst [vmem:[%s2584_s30 + $0xa8] sm:$0xff] %v1484_v54  ;;  %1848 = vrcp.f32 %v891_v53  ;;  %v599_v14 = vsel %vm598_vm7, %v2893_v58, %v597_v30  ;;  %v590_v2 = vmul.f32 %v1841_v63, %v2914_v15  ;;  %v594_v50 = vand.u32 2147483648, %v2914_v15 }
 0x134   : > { %v1355_v3 = vmul.f32 %v2412_v41, %v1147_v24  ;;  %1850 = vrsqrt.f32 %v2951_v31  ;;  %v2987_v4 = vsel %vm600_vm8, %v601_v44, %v599_v14  ;;  %vm593_vm10 = vcmp.eq.f32.partialorder %v2914_v15, 0.0 }
 0x135   : > { %1852 = vrsqrt.f32 %v2972_v21  ;;  %v894_v5 = vmax.f32 %v2987_v4, 1e-30  ;;  %v592_v48 = vsel %vm591_vm9, %v2914_v15, %v590_v2  ;;  %v2997_v58 = vmul.f32 %v2410_v40, %v2961_v22 }
 0x136   : > { %v1419_v46 = vsel %vm1285_vm6, %v1355_v3, 1e+08  ;;  %v2999_v38 = vsel %vm593_vm10, %v594_v50, %v592_v48  ;;  %vm612_vm11 = vcmp.eq.f32.partialorder %v2922_v28, inf  ;;  %1854 = vrsqrt.f32 %v2978_v39  ;;  %v2013_v50 = vld [vmem:[%s2283_s6 + $0xb0] sm:$0xff] }
 0x137   : > { %v1483_v0 = vmul.f32 %v2011_v10, %v1419_v46  ;;  %vm1288_vm12 = vcmp.gt.f32.partialorder %v2982_v47, 1e-08  ;;  %1856 = vrcp.f32 %v894_v5  ;;  %v893_v57 = vmax.f32 %v2999_v38, 1e-30 }
 0x138   : > { %vm614_vm13 = vcmp.eq.f32.partialorder %v2922_v28, 0.0  ;;  %v615_v15 = vand.u32 2147483648, %v2922_v28  ;;  %vm605_vm14 = vcmp.eq.f32.partialorder %v2943_v18, inf  ;;  %vm607_vm15 = vcmp.eq.f32.partialorder %v2943_v18, 0.0 }
 0x139   : > { %v1843_v51 = vpop.eup %1842  ;;  %1547 = vst [vmem:[%s2584_s30 + $0xa0] sm:$0xff] %v1483_v0  ;;  %v608_v60 = vand.u32 2147483648, %v2943_v18  ;;  %1858 = vrcp.f32 %v893_v57  ;;  %vm626_vm0 = vcmp.eq.f32.partialorder %v2951_v31, inf  ;;  %vm628_vm1 = vcmp.eq.f32.partialorder %v2951_v31, 0.0 }
 0x13a   : > { %v1845_v11 = vpop.eup %1844  ;;  %v1022_v25 = vmul.f32 %v1843_v51, %v892_v12  ;;  %v629_v36 = vand.u32 2147483648, %v2951_v31  ;;  %vm619_vm2 = vcmp.eq.f32.partialorder %v2972_v21, inf  ;;  %1860 = vrsqrt.f32 %v3010_v17 }
 0x13b   : > { %v611_v6 = vmul.f32 %v1845_v11, %v2922_v28  ;;  %v1847_v34 = vpop.eup %1846  ;;  %vm1287_vm3 = vcmp.gt.f32.partialorder %v2997_v58, 1e-08  ;;  %v3030_v27 = vmul.f32 %v2410_v40, %v2987_v4  ;;  %1862 = vrsqrt.f32 %v3017_v55 }
 0x13c   : > { %v1086_v32 = vsub.f32 2.0, %v1022_v25  ;;  %v604_v59 = vmul.f32 %v1847_v34, %v2943_v18  ;;  %vm621_vm4 = vcmp.eq.f32.partialorder %v2972_v21, 0.0  ;;  %v622_v29 = vand.u32 2147483648, %v2972_v21 }
 0x13d   : > { %v1849_v9 = vpop.eup %1848  ;;  %v613_v61 = vsel %vm612_vm11, %v2922_v28, %v611_v6  ;;  %v3047_v49 = vmul.f32 %v2410_v40, %v2999_v38  ;;  %vm640_vm5 = vcmp.eq.f32.partialorder %v2978_v39, inf  ;;  %vm642_vm6 = vcmp.eq.f32.partialorder %v2978_v39, 0.0 }
 0x13e   : > { %v1851_v37 = vpop.eup %1850  ;;  %v1150_v42 = vmul.f32 %v1843_v51, %v1086_v32  ;;  %v1021_v43 = vmul.f32 %v1849_v9, %v891_v53  ;;  %v3041_v45 = vsel %vm614_vm13, %v615_v15, %v613_v61  ;;  %v606_v26 = vsel %vm605_vm14, %v2943_v18, %v604_v59 }
 0x13f   : > { %v896_v19 = vmax.f32 %v3041_v45, 1e-30  ;;  %v625_v12 = vmul.f32 %v1851_v37, %v2951_v31  ;;  %v1853_v23 = vpop.eup %1852  ;;  %v3057_v13 = vsel %vm607_vm15, %v608_v60, %v606_v26  ;;  %v643_v20 = vand.u32 2147483648, %v2978_v39 }
 0x140   : > { %v1358_v28 = vmul.f32 %v2412_v41, %v1150_v42  ;;  %v1085_v8 = vsub.f32 2.0, %v1021_v43  ;;  %v895_v52 = vmax.f32 %v3057_v13, 1e-30  ;;  %v1855_v62 = vpop.eup %1854  ;;  %v618_v16 = vmul.f32 %v1853_v23, %v2972_v21  ;;  %v2014_v43 = vld [vmem:[%s2283_s6 + $0xc8] sm:$0xff]  ;;  %v2015_v23 = vld [vmem:[%s2283_s6 + $0xc0] sm:$0xff] }
 0x141   : > { %1864 = vrcp.f32 %v896_v19  ;;  %v627_v18 = vsel %vm626_vm0, %v2951_v31, %v625_v12  ;;  %v1857_v22 = vpop.eup %1856  ;;  %vm1290_vm7 = vcmp.gt.f32.partialorder %v3030_v27, 1e-08  ;;  %vm633_vm8 = vcmp.eq.f32.partialorder %v3010_v17, inf }
 0x142   : > { %v1422_v1 = vsel %vm1288_vm12, %v1358_v28, 1e+08  ;;  %v1149_v35 = vmul.f32 %v1849_v9, %v1085_v8  ;;  %1866 = vrcp.f32 %v895_v52  ;;  %v3079_v53 = vsel %vm628_vm1, %v629_v36, %v627_v18 }
 0x143   : > { %v1486_v54 = vmul.f32 %v2012_v56, %v1422_v1  ;;  %v1024_v24 = vmul.f32 %v1857_v22, %v894_v5  ;;  %v898_v30 = vmax.f32 %v3079_v53, 1e-30  ;;  %vm635_vm9 = vcmp.eq.f32.partialorder %v3010_v17, 0.0  ;;  %v1859_v63 = vpop.eup %1858  ;;  %v3176_v56 = vpop.xlane.xlu0 %361 }
 0x144   : > { %v1357_v7 = vmul.f32 %v2412_v41, %v1149_v35  ;;  %vm1289_vm10 = vcmp.gt.f32.partialorder %v3047_v49, 1e-08  ;;  %v620_v31 = vsel %vm619_vm2, %v2972_v21, %v618_v16  ;;  %v639_v3 = vmul.f32 %v1855_v62, %v2978_v39  ;;  %v1861_v47 = vpop.eup %1860 }
 0x145   : > { %1550 = vst [vmem:[%s2584_s30 + $0xb8] sm:$0xff] %v1486_v54  ;;  %v636_v44 = vand.u32 2147483648, %v3010_v17  ;;  %1868 = vrsqrt.f32 %v3071_v33  ;;  %v1088_v2 = vsub.f32 2.0, %v1024_v24  ;;  %v1023_v46 = vmul.f32 %v1859_v63, %v893_v57  ;;  %v1863_v4 = vpop.eup %1862 }
 0x146   : > { %v1421_v14 = vsel %vm1287_vm3, %v1357_v7, 1e+08  ;;  %1870 = vrcp.f32 %v898_v30  ;;  %v3104_v0 = vsel %vm621_vm4, %v622_v29, %v620_v31  ;;  %v641_v5 = vsel %vm640_vm5, %v2978_v39, %v639_v3 }
 0x147   : > { %v1485_v10 = vmul.f32 %v2013_v50, %v1421_v14  ;;  %vm654_vm11 = vcmp.eq.f32.partialorder %v3017_v55, inf  ;;  %v1152_v48 = vmul.f32 %v1857_v22, %v1088_v2  ;;  %v1087_v58 = vsub.f32 2.0, %v1023_v46 }
 0x148   : > { %v897_v38 = vmax.f32 %v3104_v0, 1e-30  ;;  %vm656_vm12 = vcmp.eq.f32.partialorder %v3017_v55, 0.0  ;;  %v1228_v51 = vmul.f32 %v2410_v40, %v3041_v45  ;;  %v3117_v21 = vsel %vm642_vm6, %v643_v20, %v641_v5 }
 0x149   : > { %1549 = vst [vmem:[%s2584_s30 + $0xb0] sm:$0xff] %v1485_v10  ;;  %v632_v57 = vmul.f32 %v1861_v47, %v3010_v17  ;;  %v653_v15 = vmul.f32 %v1863_v4, %v3017_v55  ;;  %v1360_v11 = vmul.f32 %v2412_v41, %v1152_v48  ;;  %v1151_v25 = vmul.f32 %v1859_v63, %v1087_v58  ;;  %v2016_v47 = vld [vmem:[%s2283_s6 + $0xd8] sm:$0xff]  ;;  %v2017_v10 = vld [vmem:[%s2283_s6 + $0xd0] sm:$0xff] }
 0x14a   : > { %v1227_v60 = vmul.f32 %v2410_v40, %v3057_v13  ;;  %1872 = vrcp.f32 %v897_v38  ;;  %v900_v34 = vmax.f32 %v3117_v21, 1e-30  ;;  %v657_v36 = vand.u32 2147483648, %v3017_v55 }
 0x14b   : > { %v1865_v6 = vpop.eup %1864  ;;  %v634_v39 = vsel %vm633_vm8, %v3010_v17, %v632_v57  ;;  %v655_v32 = vsel %vm654_vm11, %v3017_v55, %v653_v15  ;;  %v1424_v9 = vsel %vm1290_vm7, %v1360_v11, 1e+08  ;;  %v1359_v61 = vmul.f32 %v2412_v41, %v1151_v25  ;;  %v3151_v17 = vpop.xlane.xlu1 %363  ;;  %v2018_v11 = vld [vmem:[%s2283_s6 + $0xe8] sm:$0xff] }
 0x14c   : > { %v1026_v59 = vmul.f32 %v1865_v6, %v896_v19  ;;  %v3141_v37 = vsel %vm635_vm9, %v636_v44, %v634_v39  ;;  %v1867_v42 = vpop.eup %1866  ;;  %v1488_v29 = vmul.f32 %v2014_v43, %v1424_v9  ;;  %vm1292_vm13 = vcmp.gt.f32.partialorder %v1228_v51, 1e-08 }
 0x14d   : > { %1874 = vrcp.f32 %v900_v34  ;;  %v899_v27 = vmax.f32 %v3141_v37, 1e-30  ;;  %v1423_v26 = vsel %vm1289_vm10, %v1359_v61, 1e+08  ;;  %v1025_v45 = vmul.f32 %v1867_v42, %v895_v52 }
 0x14e   : > { %v1090_v12 = vsub.f32 2.0, %v1026_v59  ;;  %vm1291_vm14 = vcmp.gt.f32.partialorder %v1227_v60, 1e-08  ;;  %1552 = vst [vmem:[%s2584_s30 + $0xc8] sm:$0xff] %v1488_v29  ;;  %v1487_v28 = vmul.f32 %v2015_v23, %v1423_v26  ;;  %v1230_v8 = vmul.f32 %v2410_v40, %v3079_v53 }
 0x14f   : > { %v1869_v19 = vpop.eup %1868  ;;  %1876 = vrcp.f32 %v899_v27  ;;  %v3161_v49 = vsel %vm656_vm12, %v657_v36, %v655_v32  ;;  %v1089_v52 = vsub.f32 2.0, %v1025_v45  ;;  %vm647_vm15 = vcmp.eq.f32.partialorder %v3071_v33, inf  ;;  %v3192_v44 = vpop.xlane.xlu1 %367 }
 0x150   : > { %v1871_v13 = vpop.eup %1870  ;;  %v1154_v20 = vmul.f32 %v1865_v6, %v1090_v12  ;;  %v902_v62 = vmax.f32 %v3161_v49, 1e-30  ;;  %1551 = vst [vmem:[%s2584_s30 + $0xc0] sm:$0xff] %v1487_v28  ;;  %v1229_v35 = vmul.f32 %v2410_v40, %v3104_v0  ;;  %v646_v18 = vmul.f32 %v1869_v19, %v3071_v33 }
 0x151   : > { %v1028_v1 = vmul.f32 %v1871_v13, %v898_v30  ;;  %1878 = vrsqrt.f32 %v3151_v17  ;;  %v1153_v16 = vmul.f32 %v1867_v42, %v1089_v52  ;;  %v650_v22 = vand.u32 2147483648, %v3071_v33 }
 0x152   : > { %v1362_v55 = vmul.f32 %v2412_v41, %v1154_v20  ;;  %1880 = vrcp.f32 %v902_v62  ;;  %v3180_v53 = vmul.f32 %v2410_v40, %v3117_v21  ;;  %v648_v7 = vsel %vm647_vm15, %v3071_v33, %v646_v18 }
 0x153   : > { %v1092_v54 = vsub.f32 2.0, %v1028_v1  ;;  %vm649_vm0 = vcmp.eq.f32.partialorder %v3071_v33, 0.0  ;;  %v1361_v63 = vmul.f32 %v2412_v41, %v1153_v16  ;;  %v3188_v31 = vmul.f32 %v2410_v40, %v3141_v37 }
 0x154   : > { %v1873_v24 = vpop.eup %1872  ;;  %v1426_v30 = vsel %vm1292_vm13, %v1362_v55, 1e+08  ;;  %v3190_v3 = vsel %vm649_vm0, %v650_v22, %v648_v7  ;;  %1882 = vrsqrt.f32 %v3176_v56  ;;  %vm1294_vm1 = vcmp.gt.f32.partialorder %v1230_v8, 1e-08 }
 0x155   : > { %v1490_v14 = vmul.f32 %v2016_v47, %v1426_v30  ;;  %v1156_v2 = vmul.f32 %v1871_v13, %v1092_v54  ;;  %v1027_v33 = vmul.f32 %v1873_v24, %v897_v38  ;;  %v901_v46 = vmax.f32 %v3190_v3, 1e-30  ;;  %v3208_v38 = vpop.xlane.xlu0 %365 }
 0x156   : > { %v1425_v4 = vsel %vm1291_vm14, %v1361_v63, 1e+08  ;;  %vm1293_vm2 = vcmp.gt.f32.partialorder %v1229_v35, 1e-08  ;;  %vm1296_vm3 = vcmp.gt.f32.partialorder %v3180_v53, 1e-08  ;;  %v1234_v6 = vmul.f32 %v2410_v40, %v3161_v49 }
 0x157   : > { %v1875_v50 = vpop.eup %1874  ;;  %1554 = vst [vmem:[%s2584_s30 + $0xd8] sm:$0xff] %v1490_v14  ;;  %v1489_v5 = vmul.f32 %v2017_v10, %v1425_v4  ;;  %v1364_v48 = vmul.f32 %v2412_v41, %v1156_v2  ;;  %v1091_v58 = vsub.f32 2.0, %v1027_v33  ;;  %1884 = vrcp.f32 %v901_v46  ;;  %v2021_v53 = vld [vmem:[%s2283_s6 + $0xf0] sm:$0xff] }
 0x158   : > { %v1030_v0 = vmul.f32 %v1875_v50, %v900_v34  ;;  %vm1295_vm4 = vcmp.gt.f32.partialorder %v3188_v31, 1e-08  ;;  %1886 = vrsqrt.f32 %v3192_v44  ;;  %v3218_v34 = vpop.xlane.xlu1 %371  ;;  %vm668_vm5 = vcmp.eq.f32.partialorder %v3151_v17, inf }
 0x159   : > { %v1877_v51 = vpop.eup %1876  ;;  %1553 = vst [vmem:[%s2584_s30 + $0xd0] sm:$0xff] %v1489_v5  ;;  %v1428_v57 = vsel %vm1294_vm1, %v1364_v48, 1e+08  ;;  %v1155_v15 = vmul.f32 %v1873_v24, %v1091_v58  ;;  %vm670_vm6 = vcmp.eq.f32.partialorder %v3151_v17, 0.0  ;;  %1888 = vrsqrt.f32 %v3208_v38  ;;  %v3251_v52 = vpop.xlane.xlu0 %369 }
 0x15a   : > { %v1492_v25 = vmul.f32 %v2018_v11, %v1428_v57  ;;  %v1094_v60 = vsub.f32 2.0, %v1030_v0  ;;  %v1029_v21 = vmul.f32 %v1877_v51, %v899_v27  ;;  %v671_v37 = vand.u32 2147483648, %v3151_v17  ;;  %v2019_v27 = vld [vmem:[%s2283_s6 + $0xe0] sm:$0xff] }
 0x15b   : > { %v1879_v39 = vpop.eup %1878  ;;  %v1363_v32 = vmul.f32 %v2412_v41, %v1155_v15  ;;  %v3232_v29 = vmul.f32 %v2410_v40, %v3190_v3  ;;  %1890 = vrsqrt.f32 %v3218_v34  ;;  %vm1298_vm7 = vcmp.gt.f32.partialorder %v1234_v6, 1e-08 }
 0x15c   : > { %v1881_v36 = vpop.eup %1880  ;;  %1556 = vst [vmem:[%s2584_s30 + $0xe8] sm:$0xff] %v1492_v25  ;;  %v1158_v9 = vmul.f32 %v1875_v50, %v1094_v60  ;;  %v1093_v61 = vsub.f32 2.0, %v1029_v21  ;;  %v667_v59 = vmul.f32 %v1879_v39, %v3151_v17  ;;  %vm661_vm8 = vcmp.eq.f32.partialorder %v3176_v56, inf  ;;  %v3287_v5 = vpop.xlane.xlu1 %375  ;;  %v2023_v39 = vld [vmem:[%s2283_s6 + $0x100] sm:$0xff] }
 0x15d   : > { %v1427_v42 = vsel %vm1293_vm2, %v1363_v32, 1e+08  ;;  %v1032_v43 = vmul.f32 %v1881_v36, %v902_v62  ;;  %vm663_vm9 = vcmp.eq.f32.partialorder %v3176_v56, 0.0  ;;  %v2020_v62 = vld [vmem:[%s2283_s6 + $0xf8] sm:$0xff]  ;;  %vm1297_vm10 = vcmp.gt.f32.partialorder %v3232_v29, 1e-08 }
 0x15e   : > { %v1491_v26 = vmul.f32 %v2019_v27, %v1427_v42  ;;  %v1366_v12 = vmul.f32 %v2412_v41, %v1158_v9  ;;  %v1157_v45 = vmul.f32 %v1877_v51, %v1093_v61  ;;  %v669_v19 = vsel %vm668_vm5, %v3151_v17, %v667_v59  ;;  %v1883_v8 = vpop.eup %1882  ;;  %v3293_v51 = vpop.xlane.xlu0 %373 }
 0x15f   : > { %v1096_v23 = vsub.f32 2.0, %v1032_v43  ;;  %v3242_v28 = vsel %vm670_vm6, %v671_v37, %v669_v19  ;;  %v660_v18 = vmul.f32 %v1883_v8, %v3176_v56  ;;  %v664_v55 = vand.u32 2147483648, %v3176_v56 }
 0x160   : > { %1555 = vst [vmem:[%s2584_s30 + $0xe0] sm:$0xff] %v1491_v26  ;;  %v1430_v49 = vsel %vm1296_vm3, %v1366_v12, 1e+08  ;;  %v1365_v13 = vmul.f32 %v2412_v41, %v1157_v45  ;;  %v904_v20 = vmax.f32 %v3242_v28, 1e-30  ;;  %vm682_vm11 = vcmp.eq.f32.partialorder %v3192_v44, inf  ;;  %v3319_v59 = vpop.xlane.xlu1 %379 }
 0x161   : > { %v1885_v17 = vpop.eup %1884  ;;  %v1494_v1 = vmul.f32 %v2020_v62, %v1430_v49  ;;  %v1160_v35 = vmul.f32 %v1881_v36, %v1096_v23  ;;  %v662_v30 = vsel %vm661_vm8, %v3176_v56, %v660_v18  ;;  %vm684_vm12 = vcmp.eq.f32.partialorder %v3192_v44, 0.0 }
 0x162   : > { %v1429_v16 = vsel %vm1295_vm4, %v1365_v13, 1e+08  ;;  %v1031_v22 = vmul.f32 %v1885_v17, %v901_v46  ;;  %1892 = vrcp.f32 %v904_v20  ;;  %v1887_v54 = vpop.eup %1886  ;;  %v3273_v31 = vsel %vm663_vm9, %v664_v55, %v662_v30  ;;  %v2022_v46 = vld [vmem:[%s2283_s6 + $0x108] sm:$0xff]  ;;  %v2024_v30 = vld [vmem:[%s2283_s6 + $0x118] sm:$0xff] }
 0x163   : > { %1558 = vst [vmem:[%s2584_s30 + $0xf8] sm:$0xff] %v1494_v1  ;;  %v1493_v7 = vmul.f32 %v2021_v53, %v1429_v16  ;;  %v1368_v24 = vmul.f32 %v2412_v41, %v1160_v35  ;;  %1894 = vrsqrt.f32 %v3251_v52  ;;  %v681_v3 = vmul.f32 %v1887_v54, %v3192_v44  ;;  %v1889_v47 = vpop.eup %1888 }
 0x164   : > { %v1095_v63 = vsub.f32 2.0, %v1031_v22  ;;  %v903_v2 = vmax.f32 %v3273_v31, 1e-30  ;;  %v685_v33 = vand.u32 2147483648, %v3192_v44  ;;  %vm675_vm13 = vcmp.eq.f32.partialorder %v3208_v38, inf }
 0x165   : > { %1557 = vst [vmem:[%s2584_s30 + $0xf0] sm:$0xff] %v1493_v7  ;;  %v1432_v14 = vsel %vm1298_vm7, %v1368_v24, 1e+08  ;;  %v683_v50 = vsel %vm682_vm11, %v3192_v44, %v681_v3  ;;  %v674_v10 = vmul.f32 %v1889_v47, %v3208_v38  ;;  %v1891_v48 = vpop.eup %1890  ;;  %vm677_vm14 = vcmp.eq.f32.partialorder %v3208_v38, 0.0 }
 0x166   : > { %v1496_v4 = vmul.f32 %v2022_v46, %v1432_v14  ;;  %v1159_v56 = vmul.f32 %v1885_v17, %v1095_v63  ;;  %1896 = vrcp.f32 %v903_v2  ;;  %v3289_v58 = vsel %vm684_vm12, %v685_v33, %v683_v50  ;;  %v3356_v17 = vpop.xlane.xlu1 %383 }
 0x167   : > { %v678_v0 = vand.u32 2147483648, %v3208_v38  ;;  %v906_v44 = vmax.f32 %v3289_v58, 1e-30  ;;  %v676_v15 = vsel %vm675_vm13, %v3208_v38, %v674_v10  ;;  %vm696_vm15 = vcmp.eq.f32.partialorder %v3218_v34, inf }
 0x168   : > { %1560 = vst [vmem:[%s2584_s30 + $0x108] sm:$0xff] %v1496_v4  ;;  %v1367_v57 = vmul.f32 %v2412_v41, %v1159_v56  ;;  %v1236_v11 = vmul.f32 %v2410_v40, %v3242_v28  ;;  %v695_v60 = vmul.f32 %v1891_v48, %v3218_v34  ;;  %1898 = vrsqrt.f32 %v3287_v5 }
 0x169   : > { %v3304_v25 = vsel %vm677_vm14, %v678_v0, %v676_v15  ;;  %1900 = vrcp.f32 %v906_v44  ;;  %v699_v38 = vand.u32 2147483648, %v3218_v34  ;;  %vm698_vm0 = vcmp.eq.f32.partialorder %v3218_v34, 0.0 }
 0x16a   : > { %v1431_v21 = vsel %vm1297_vm10, %v1367_v57, 1e+08  ;;  %v905_v6 = vmax.f32 %v3304_v25, 1e-30  ;;  %v697_v36 = vsel %vm696_vm15, %v3218_v34, %v695_v60  ;;  %v3326_v43 = vmul.f32 %v2410_v40, %v3273_v31  ;;  %v3329_v34 = vpop.xlane.xlu0 %377 }
 0x16b   : > { %v1495_v32 = vmul.f32 %v2023_v39, %v1431_v21  ;;  %v3317_v61 = vsel %vm698_vm0, %v699_v38, %v697_v36  ;;  %vm1300_vm1 = vcmp.gt.f32.partialorder %v1236_v11, 1e-08  ;;  %vm689_vm2 = vcmp.eq.f32.partialorder %v3251_v52, inf }
 0x16c   : > { %v1893_v9 = vpop.eup %1892  ;;  %1902 = vrcp.f32 %v905_v6  ;;  %v908_v29 = vmax.f32 %v3317_v61, 1e-30  ;;  %vm691_vm3 = vcmp.eq.f32.partialorder %v3251_v52, 0.0  ;;  %v692_v12 = vand.u32 2147483648, %v3251_v52 }
 0x16d   : > { %v1895_v37 = vpop.eup %1894  ;;  %1559 = vst [vmem:[%s2584_s30 + $0x100] sm:$0xff] %v1495_v32  ;;  %v1034_v42 = vmul.f32 %v1893_v9, %v904_v20  ;;  %1904 = vrsqrt.f32 %v3293_v51  ;;  %v3340_v45 = vmul.f32 %v2410_v40, %v3289_v58  ;;  %vm710_vm4 = vcmp.eq.f32.partialorder %v3287_v5, inf }
 0x16e   : > { %v688_v27 = vmul.f32 %v1895_v37, %v3251_v52  ;;  %1906 = vrcp.f32 %v908_v29  ;;  %vm1299_vm5 = vcmp.gt.f32.partialorder %v3326_v43, 1e-08  ;;  %v3348_v8 = vmul.f32 %v2410_v40, %v3304_v25  ;;  %v3365_v18 = vpop.xlane.xlu0 %381  ;;  %v2025_v25 = vld [vmem:[%s2283_s6 + $0x110] sm:$0xff]  ;;  %v3424_v43 = vpop.xlane.xlu1 %387 }
 0x16f   : > { %v1098_v26 = vsub.f32 2.0, %v1034_v42  ;;  %1908 = vrsqrt.f32 %v3319_v59  ;;  %vm712_vm6 = vcmp.eq.f32.partialorder %v3287_v5, 0.0  ;;  %v3361_v35 = vmul.f32 %v2410_v40, %v3317_v61 }
 0x170   : > { %v690_v19 = vsel %vm689_vm2, %v3251_v52, %v688_v27  ;;  %v1897_v23 = vpop.eup %1896  ;;  %1910 = vrsqrt.f32 %v3329_v34  ;;  %v713_v52 = vand.u32 2147483648, %v3287_v5  ;;  %vm703_vm7 = vcmp.eq.f32.partialorder %v3293_v51, inf }
 0x171   : > { %v1162_v28 = vmul.f32 %v1893_v9, %v1098_v26  ;;  %v3350_v49 = vsel %vm691_vm3, %v692_v12, %v690_v19  ;;  %v1033_v13 = vmul.f32 %v1897_v23, %v903_v2  ;;  %vm705_vm8 = vcmp.eq.f32.partialorder %v3293_v51, 0.0 }
 0x172   : > { %v907_v20 = vmax.f32 %v3350_v49, 1e-30  ;;  %v1899_v62 = vpop.eup %1898  ;;  %vm1302_vm9 = vcmp.gt.f32.partialorder %v3340_v45, 1e-08  ;;  %v706_v54 = vand.u32 2147483648, %v3293_v51  ;;  %vm724_vm10 = vcmp.eq.f32.partialorder %v3319_v59, inf }
 0x173   : > { %v1370_v1 = vmul.f32 %v2412_v41, %v1162_v28  ;;  %v1901_v55 = vpop.eup %1900  ;;  %v1097_v16 = vsub.f32 2.0, %v1033_v13  ;;  %v709_v22 = vmul.f32 %v1899_v62, %v3287_v5  ;;  %vm1301_vm11 = vcmp.gt.f32.partialorder %v3348_v8, 1e-08 }
 0x174   : > { %1912 = vrcp.f32 %v907_v20  ;;  %v1036_v7 = vmul.f32 %v1901_v55, %v906_v44  ;;  %vm726_vm12 = vcmp.eq.f32.partialorder %v3319_v59, 0.0  ;;  %v727_v33 = vand.u32 2147483648, %v3319_v59 }
 0x175   : > { %v1434_v53 = vsel %vm1300_vm1, %v1370_v1, 1e+08  ;;  %1914 = vrsqrt.f32 %v3356_v17  ;;  %v1161_v31 = vmul.f32 %v1897_v23, %v1097_v16  ;;  %v711_v3 = vsel %vm710_vm4, %v3287_v5, %v709_v22 }
 0x176   : > { %v1903_v24 = vpop.eup %1902  ;;  %v1498_v63 = vmul.f32 %v2024_v30, %v1434_v53  ;;  %1916 = vrsqrt.f32 %v3365_v18  ;;  %v1100_v47 = vsub.f32 2.0, %v1036_v7  ;;  %v3385_v2 = vsel %vm712_vm6, %v713_v52, %v711_v3  ;;  %v2027_v52 = vld [vmem:[%s2283_s6 + $0x120] sm:$0xff]  ;;  %v2028_v7 = vld [vmem:[%s2283_s6 + $0x138] sm:$0xff] }
 0x177   : > { %v1035_v14 = vmul.f32 %v1903_v24, %v905_v6  ;;  %v1905_v46 = vpop.eup %1904  ;;  %v1369_v4 = vmul.f32 %v2412_v41, %v1161_v31  ;;  %v3393_v56 = vmul.f32 %v2410_v40, %v3350_v49  ;;  %v910_v50 = vmax.f32 %v3385_v2, 1e-30  ;;  %v3464_v31 = vpop.xlane.xlu1 %391 }
 0x178   : > { %1562 = vst [vmem:[%s2584_s30 + $0x118] sm:$0xff] %v1498_v63  ;;  %vm717_vm13 = vcmp.eq.f32.partialorder %v3329_v34, inf  ;;  %v1907_v10 = vpop.eup %1906  ;;  %v1164_v5 = vmul.f32 %v1901_v55, %v1100_v47  ;;  %vm1304_vm14 = vcmp.gt.f32.partialorder %v3361_v35, 1e-08  ;;  %v702_v58 = vmul.f32 %v1905_v46, %v3293_v51 }
 0x179   : > { %v1099_v48 = vsub.f32 2.0, %v1035_v14  ;;  %vm719_vm15 = vcmp.eq.f32.partialorder %v3329_v34, 0.0  ;;  %v1909_v0 = vpop.eup %1908  ;;  %v1433_v57 = vsel %vm1299_vm5, %v1369_v4, 1e+08  ;;  %v1038_v44 = vmul.f32 %v1907_v10, %v908_v29  ;;  %v2026_v29 = vld [vmem:[%s2283_s6 + $0x128] sm:$0xff] }
 0x17a   : > { %1918 = vrcp.f32 %v910_v50  ;;  %v720_v15 = vand.u32 2147483648, %v3329_v34  ;;  %v1911_v11 = vpop.eup %1910  ;;  %v1497_v60 = vmul.f32 %v2025_v25, %v1433_v57  ;;  %v1372_v21 = vmul.f32 %v2412_v41, %v1164_v5 }
 0x17b   : > { %v1163_v6 = vmul.f32 %v1903_v24, %v1099_v48  ;;  %v704_v38 = vsel %vm703_vm7, %v3293_v51, %v702_v58  ;;  %v1102_v39 = vsub.f32 2.0, %v1038_v44  ;;  %v723_v36 = vmul.f32 %v1909_v0, %v3319_v59 }
 0x17c   : > { %v3414_v32 = vsel %vm705_vm8, %v706_v54, %v704_v38  ;;  %v716_v9 = vmul.f32 %v1911_v11, %v3329_v34  ;;  %1561 = vst [vmem:[%s2584_s30 + $0x110] sm:$0xff] %v1497_v60  ;;  %v1436_v61 = vsel %vm1302_vm9, %v1372_v21, 1e+08  ;;  %vm738_vm0 = vcmp.eq.f32.partialorder %v3356_v17, inf  ;;  %v3454_v54 = vpop.xlane.xlu0 %385  ;;  %v3502_v11 = vpop.xlane.xlu1 %395 }
 0x17d   : > { %v1371_v37 = vmul.f32 %v2412_v41, %v1163_v6  ;;  %v909_v42 = vmax.f32 %v3414_v32, 1e-30  ;;  %v1500_v27 = vmul.f32 %v2026_v29, %v1436_v61  ;;  %v1166_v26 = vmul.f32 %v1907_v10, %v1102_v39  ;;  %v2030_v61 = vld [vmem:[%s2283_s6 + $0x148] sm:$0xff] }
 0x17e   : > { %v1913_v51 = vpop.eup %1912  ;;  %v725_v12 = vsel %vm724_vm10, %v3319_v59, %v723_v36  ;;  %v718_v45 = vsel %vm717_vm13, %v3329_v34, %v716_v9  ;;  %vm740_vm1 = vcmp.eq.f32.partialorder %v3356_v17, 0.0  ;;  %v741_v22 = vand.u32 2147483648, %v3356_v17 }
 0x17f   : > { %v1915_v19 = vpop.eup %1914  ;;  %v1435_v23 = vsel %vm1301_vm11, %v1371_v37, 1e+08  ;;  %v1037_v28 = vmul.f32 %v1913_v51, %v907_v20  ;;  %1920 = vrcp.f32 %v909_v42  ;;  %1564 = vst [vmem:[%s2584_s30 + $0x128] sm:$0xff] %v1500_v27  ;;  %v1374_v1 = vmul.f32 %v2412_v41, %v1166_v26 }
 0x180   : > { %v1917_v13 = vpop.eup %1916  ;;  %v1499_v62 = vmul.f32 %v2027_v52, %v1435_v23  ;;  %v3445_v8 = vsel %vm726_vm12, %v727_v33, %v725_v12  ;;  %v3449_v49 = vsel %vm719_vm15, %v720_v15, %v718_v45  ;;  %v737_v53 = vmul.f32 %v1915_v19, %v3356_v17  ;;  %v3487_v58 = vpop.xlane.xlu0 %389 }
 0x181   : > { %v1101_v20 = vsub.f32 2.0, %v1037_v28  ;;  %v912_v55 = vmax.f32 %v3445_v8, 1e-30  ;;  %v911_v16 = vmax.f32 %v3449_v49, 1e-30  ;;  %v730_v34 = vmul.f32 %v1917_v13, %v3365_v18  ;;  %v3534_v26 = vpop.xlane.xlu1 %399 }
 0x182   : > { %1563 = vst [vmem:[%s2584_s30 + $0x120] sm:$0xff] %v1499_v62  ;;  %v1438_v59 = vsel %vm1304_vm14, %v1374_v1, 1e+08  ;;  %vm731_vm2 = vcmp.eq.f32.partialorder %v3365_v18, inf  ;;  %v734_v63 = vand.u32 2147483648, %v3365_v18  ;;  %v739_v35 = vsel %vm738_vm0, %v3356_v17, %v737_v53 }
 0x183   : > { %v1502_v24 = vmul.f32 %v2028_v7, %v1438_v59  ;;  %v1165_v30 = vmul.f32 %v1913_v51, %v1101_v20  ;;  %1922 = vrcp.f32 %v912_v55  ;;  %v732_v47 = vsel %vm731_vm2, %v3365_v18, %v730_v34  ;;  %v2031_v20 = vld [vmem:[%s2283_s6 + $0x140] sm:$0xff] }
 0x184   : > { %v1919_v3 = vpop.eup %1918  ;;  %1924 = vrcp.f32 %v911_v16  ;;  %vm733_vm3 = vcmp.eq.f32.partialorder %v3365_v18, 0.0  ;;  %v3479_v46 = vsel %vm740_vm1, %v741_v22, %v739_v35  ;;  %vm1303_vm4 = vcmp.gt.f32.partialorder %v3393_v56, 1e-08  ;;  %v3524_v36 = vpop.xlane.xlu0 %393 }
 0x185   : > { %1566 = vst [vmem:[%s2584_s30 + $0x138] sm:$0xff] %v1502_v24  ;;  %v1373_v14 = vmul.f32 %v2412_v41, %v1165_v30  ;;  %v1040_v33 = vmul.f32 %v1919_v3, %v910_v50  ;;  %v3481_v4 = vsel %vm733_vm3, %v734_v63, %v732_v47  ;;  %v914_v10 = vmax.f32 %v3479_v46, 1e-30  ;;  %v2029_v50 = vld [vmem:[%s2283_s6 + $0x130] sm:$0xff] }
 0x186   : > { %v913_v5 = vmax.f32 %v3481_v4, 1e-30  ;;  %1926 = vrsqrt.f32 %v3424_v43  ;;  %v1242_v17 = vmul.f32 %v2410_v40, %v3385_v2  ;;  %v1241_v57 = vmul.f32 %v2410_v40, %v3414_v32 }
 0x187   : > { %v1437_v18 = vsel %vm1303_vm4, %v1373_v14, 1e+08  ;;  %v1104_v48 = vsub.f32 2.0, %v1040_v33  ;;  %1928 = vrcp.f32 %v914_v10  ;;  %v3498_v15 = vmul.f32 %v2410_v40, %v3445_v8 }
 0x188   : > { %v1501_v0 = vmul.f32 %v2029_v50, %v1437_v18  ;;  %1930 = vrcp.f32 %v913_v5  ;;  %v3509_v25 = vmul.f32 %v2410_v40, %v3449_v49  ;;  %vm1306_vm5 = vcmp.gt.f32.partialorder %v1242_v17, 1e-08 }
 0x189   : > { %v1921_v56 = vpop.eup %1920  ;;  %v1168_v44 = vmul.f32 %v1919_v3, %v1104_v48  ;;  %1932 = vrsqrt.f32 %v3454_v54  ;;  %vm1305_vm6 = vcmp.gt.f32.partialorder %v1241_v57, 1e-08  ;;  %vm1308_vm7 = vcmp.gt.f32.partialorder %v3498_v15, 1e-08 }
 0x18a   : > { %1565 = vst [vmem:[%s2584_s30 + $0x130] sm:$0xff] %v1501_v0  ;;  %v1039_v2 = vmul.f32 %v1921_v56, %v909_v42  ;;  %1934 = vrsqrt.f32 %v3464_v31  ;;  %v3518_v39 = vmul.f32 %v2410_v40, %v3479_v46  ;;  %v3522_v32 = vmul.f32 %v2410_v40, %v3481_v4  ;;  %v2033_v0 = vld [vmem:[%s2283_s6 + $0x150] sm:$0xff] }
 0x18b   : > { %v1376_v60 = vmul.f32 %v2412_v41, %v1168_v44  ;;  %1936 = vrsqrt.f32 %v3487_v58  ;;  %vm1307_vm8 = vcmp.gt.f32.partialorder %v3509_v25, 1e-08  ;;  %vm752_vm9 = vcmp.eq.f32.partialorder %v3424_v43, inf }
 0x18c   : > { %v1103_v21 = vsub.f32 2.0, %v1039_v2  ;;  %1938 = vrsqrt.f32 %v3502_v11  ;;  %vm754_vm10 = vcmp.eq.f32.partialorder %v3424_v43, 0.0  ;;  %v755_v27 = vand.u32 2147483648, %v3424_v43 }
 0x18d   : > { %v1923_v6 = vpop.eup %1922  ;;  %v1440_v38 = vsel %vm1306_vm5, %v1376_v60, 1e+08  ;;  %vm745_vm11 = vcmp.eq.f32.partialorder %v3454_v54, inf  ;;  %1940 = vrsqrt.f32 %v3524_v36  ;;  %vm747_vm12 = vcmp.eq.f32.partialorder %v3454_v54, 0.0 }
 0x18e   : > { %v1925_v9 = vpop.eup %1924  ;;  %v1504_v37 = vmul.f32 %v2030_v61, %v1440_v38  ;;  %v1167_v42 = vmul.f32 %v1921_v56, %v1103_v21  ;;  %v1042_v51 = vmul.f32 %v1923_v6, %v912_v55  ;;  %v748_v28 = vand.u32 2147483648, %v3454_v54 }
 0x18f   : > { %v1041_v29 = vmul.f32 %v1925_v9, %v911_v16  ;;  %v769_v13 = vand.u32 2147483648, %v3464_v31  ;;  %vm1310_vm13 = vcmp.gt.f32.partialorder %v3518_v39, 1e-08  ;;  %vm766_vm14 = vcmp.eq.f32.partialorder %v3464_v31, inf }
 0x190   : > { %1568 = vst [vmem:[%s2584_s30 + $0x148] sm:$0xff] %v1504_v37  ;;  %v1375_v12 = vmul.f32 %v2412_v41, %v1167_v42  ;;  %v1106_v45 = vsub.f32 2.0, %v1042_v51  ;;  %v1927_v19 = vpop.eup %1926  ;;  %1942 = vrsqrt.f32 %v3534_v26  ;;  %vm1309_vm15 = vcmp.gt.f32.partialorder %v3522_v32, 1e-08  ;;  %v3605_v42 = vpop.xlane.xlu0 %397 }
 0x191   : > { %v1105_v23 = vsub.f32 2.0, %v1041_v29  ;;  %v1929_v52 = vpop.eup %1928  ;;  %v751_v8 = vmul.f32 %v1927_v19, %v3424_v43  ;;  %vm759_vm0 = vcmp.eq.f32.partialorder %v3487_v58, inf  ;;  %vm768_vm1 = vcmp.eq.f32.partialorder %v3464_v31, 0.0  ;;  %v2034_v29 = vld [vmem:[%s2283_s6 + $0x168] sm:$0xff] }
 0x192   : > { %v1439_v62 = vsel %vm1305_vm6, %v1375_v12, 1e+08  ;;  %v1170_v1 = vmul.f32 %v1923_v6, %v1106_v45  ;;  %v1931_v49 = vpop.eup %1930  ;;  %v1044_v22 = vmul.f32 %v1929_v52, %v914_v10  ;;  %vm761_vm2 = vcmp.eq.f32.partialorder %v3487_v58, 0.0  ;;  %v2032_v10 = vld [vmem:[%s2283_s6 + $0x158] sm:$0xff]  ;;  %v2035_v12 = vld [vmem:[%s2283_s6 + $0x160] sm:$0xff] }
 0x193   : > { %v1503_v55 = vmul.f32 %v2031_v20, %v1439_v62  ;;  %v1169_v16 = vmul.f32 %v1925_v9, %v1105_v23  ;;  %v1933_v59 = vpop.eup %1932  ;;  %v1043_v34 = vmul.f32 %v1931_v49, %v913_v5  ;;  %v753_v7 = vsel %vm752_vm9, %v3424_v43, %v751_v8 }
 0x194   : > { %v1378_v53 = vmul.f32 %v2412_v41, %v1170_v1  ;;  %v762_v24 = vand.u32 2147483648, %v3487_v58  ;;  %v1935_v30 = vpop.eup %1934  ;;  %v1108_v3 = vsub.f32 2.0, %v1044_v22  ;;  %v3566_v35 = vsel %vm754_vm10, %v755_v27, %v753_v7  ;;  %v3638_v1 = vpop.xlane.xlu1 %403 }
 0x195   : > { %1567 = vst [vmem:[%s2584_s30 + $0x140] sm:$0xff] %v1503_v55  ;;  %v1377_v63 = vmul.f32 %v2412_v41, %v1169_v16  ;;  %v744_v47 = vmul.f32 %v1933_v59, %v3454_v54  ;;  %v1937_v14 = vpop.eup %1936  ;;  %v1107_v46 = vsub.f32 2.0, %v1043_v34  ;;  %v916_v4 = vmax.f32 %v3566_v35, 1e-30  ;;  %v3649_v20 = vpop.xlane.xlu0 %401 }
 0x196   : > { %v1442_v33 = vsel %vm1308_vm7, %v1378_v53, 1e+08  ;;  %vm780_vm3 = vcmp.eq.f32.partialorder %v3502_v11, inf  ;;  %v1172_v18 = vmul.f32 %v1929_v52, %v1108_v3  ;;  %v1939_v50 = vpop.eup %1938  ;;  %vm782_vm4 = vcmp.eq.f32.partialorder %v3502_v11, 0.0 }
 0x197   : > { %v1506_v5 = vmul.f32 %v2032_v10, %v1442_v33  ;;  %v1441_v43 = vsel %vm1307_vm8, %v1377_v63, 1e+08  ;;  %v746_v48 = vsel %vm745_vm11, %v3454_v54, %v744_v47  ;;  %v1171_v57 = vmul.f32 %v1931_v49, %v1107_v46  ;;  %v1941_v25 = vpop.eup %1940 }
 0x198   : > { %v1505_v17 = vmul.f32 %v2033_v0, %v1441_v43  ;;  %1944 = vrcp.f32 %v916_v4  ;;  %v1380_v56 = vmul.f32 %v2412_v41, %v1172_v18  ;;  %v3587_v44 = vsel %vm747_vm12, %v748_v28, %v746_v48 }
 0x199   : > { %1570 = vst [vmem:[%s2584_s30 + $0x158] sm:$0xff] %v1506_v5  ;;  %v765_v15 = vmul.f32 %v1935_v30, %v3464_v31  ;;  %v758_v2 = vmul.f32 %v1937_v14, %v3487_v58  ;;  %v1379_v60 = vmul.f32 %v2412_v41, %v1171_v57  ;;  %v915_v21 = vmax.f32 %v3587_v44, 1e-30  ;;  %v3677_v14 = vpop.xlane.xlu0 %405 }
 0x19a   : > { %1569 = vst [vmem:[%s2584_s30 + $0x150] sm:$0xff] %v1505_v17  ;;  %v779_v6 = vmul.f32 %v1939_v50, %v3502_v11  ;;  %v783_v38 = vand.u32 2147483648, %v3502_v11  ;;  %v1444_v54 = vsel %vm1310_vm13, %v1380_v56, 1e+08  ;;  %v772_v37 = vmul.f32 %v1941_v25, %v3524_v36  ;;  %v1943_v51 = vpop.eup %1942  ;;  %v2036_v25 = vld [vmem:[%s2283_s6 + $0x178] sm:$0xff] }
 0x19b   : > { %v767_v9 = vsel %vm766_vm14, %v3464_v31, %v765_v15  ;;  %v760_v61 = vsel %vm759_vm0, %v3487_v58, %v758_v2  ;;  %v1508_v27 = vmul.f32 %v2034_v29, %v1444_v54  ;;  %v1443_v39 = vsel %vm1309_vm15, %v1379_v60, 1e+08 }
 0x19c   : > { %1946 = vrcp.f32 %v915_v21  ;;  %vm773_vm5 = vcmp.eq.f32.partialorder %v3524_v36, inf  ;;  %v1507_v45 = vmul.f32 %v2035_v12, %v1443_v39  ;;  %v3616_v19 = vsel %vm768_vm1, %v769_v13, %v767_v9 }
 0x19d   : > { %v3620_v23 = vsel %vm761_vm2, %v762_v24, %v760_v61  ;;  %v781_v32 = vsel %vm780_vm3, %v3502_v11, %v779_v6  ;;  %1572 = vst [vmem:[%s2584_s30 + $0x168] sm:$0xff] %v1508_v27  ;;  %v918_v28 = vmax.f32 %v3616_v19, 1e-30  ;;  %vm775_vm6 = vcmp.eq.f32.partialorder %v3524_v36, 0.0  ;;  %v3665_v24 = vpop.xlane.xlu1 %407 }
 0x19e   : > { %v917_v52 = vmax.f32 %v3620_v23, 1e-30  ;;  %v776_v62 = vand.u32 2147483648, %v3524_v36  ;;  %1571 = vst [vmem:[%s2584_s30 + $0x160] sm:$0xff] %v1507_v45  ;;  %v3633_v31 = vsel %vm782_vm4, %v783_v38, %v781_v32  ;;  %v774_v58 = vsel %vm773_vm5, %v3524_v36, %v772_v37  ;;  %v2037_v32 = vld [vmem:[%s2283_s6 + $0x170] sm:$0xff] }
 0x19f   : > { %v793_v13 = vmul.f32 %v1943_v51, %v3534_v26  ;;  %1948 = vrsqrt.f32 %v3605_v42  ;;  %v920_v8 = vmax.f32 %v3633_v31, 1e-30  ;;  %vm794_vm7 = vcmp.eq.f32.partialorder %v3534_v26, inf }
 0x1a0   : > { %1950 = vrcp.f32 %v918_v28  ;;  %v797_v49 = vand.u32 2147483648, %v3534_v26  ;;  %v3645_v11 = vsel %vm775_vm6, %v776_v62, %v774_v58  ;;  %vm796_vm8 = vcmp.eq.f32.partialorder %v3534_v26, 0.0 }
 0x1a1   : > { %1952 = vrcp.f32 %v917_v52  ;;  %v795_v36 = vsel %vm794_vm7, %v3534_v26, %v793_v13  ;;  %v1248_v16 = vmul.f32 %v2410_v40, %v3566_v35  ;;  %v919_v22 = vmax.f32 %v3645_v11, 1e-30  ;;  %v3703_v15 = vpop.xlane.xlu1 %411 }
 0x1a2   : > { %v1945_v55 = vpop.eup %1944  ;;  %1954 = vrcp.f32 %v920_v8  ;;  %v3654_v59 = vsel %vm796_vm8, %v797_v49, %v795_v36  ;;  %v1247_v7 = vmul.f32 %v2410_v40, %v3587_v44  ;;  %v3669_v63 = vmul.f32 %v2410_v40, %v3616_v19 }
 0x1a3   : > { %v1046_v53 = vmul.f32 %v1945_v55, %v916_v4  ;;  %v922_v34 = vmax.f32 %v3654_v59, 1e-30  ;;  %1956 = vrcp.f32 %v919_v22  ;;  %vm1312_vm9 = vcmp.gt.f32.partialorder %v1248_v16, 1e-08 }
 0x1a4   : > { %v3674_v47 = vmul.f32 %v2410_v40, %v3620_v23  ;;  %vm1311_vm10 = vcmp.gt.f32.partialorder %v1247_v7, 1e-08  ;;  %v3681_v33 = vmul.f32 %v2410_v40, %v3633_v31  ;;  %v3685_v46 = vmul.f32 %v2410_v40, %v3645_v11 }
 0x1a5   : > { %v1110_v26 = vsub.f32 2.0, %v1046_v53  ;;  %1958 = vrcp.f32 %v922_v34  ;;  %v3691_v43 = vmul.f32 %v2410_v40, %v3654_v59  ;;  %vm787_vm11 = vcmp.eq.f32.partialorder %v3605_v42, inf }
 0x1a6   : > { %v1947_v30 = vpop.eup %1946  ;;  %1960 = vrsqrt.f32 %v3638_v1  ;;  %vm1314_vm12 = vcmp.gt.f32.partialorder %v3669_v63, 1e-08  ;;  %vm789_vm13 = vcmp.eq.f32.partialorder %v3605_v42, 0.0  ;;  %v790_v50 = vand.u32 2147483648, %v3605_v42 }
 0x1a7   : > { %v1174_v3 = vmul.f32 %v1945_v55, %v1110_v26  ;;  %v1045_v35 = vmul.f32 %v1947_v30, %v915_v21  ;;  %1962 = vrsqrt.f32 %v3649_v20  ;;  %vm1313_vm14 = vcmp.gt.f32.partialorder %v3674_v47, 1e-08  ;;  %v2040_v47 = vld [vmem:[%s2283_s6 + $0x198] sm:$0xff] }
 0x1a8   : > { %1964 = vrsqrt.f32 %v3665_v24  ;;  %vm808_vm15 = vcmp.eq.f32.partialorder %v3638_v1, inf  ;;  %v811_v44 = vand.u32 2147483648, %v3638_v1  ;;  %vm1316_vm0 = vcmp.gt.f32.partialorder %v3681_v33, 1e-08 }
 0x1a9   : > { %v1949_v4 = vpop.eup %1948  ;;  %v1382_v10 = vmul.f32 %v2412_v41, %v1174_v3  ;;  %v1109_v5 = vsub.f32 2.0, %v1045_v35  ;;  %1966 = vrsqrt.f32 %v3677_v14  ;;  %vm810_vm1 = vcmp.eq.f32.partialorder %v3638_v1, 0.0 }
 0x1aa   : > { %v1951_v18 = vpop.eup %1950  ;;  %v786_v48 = vmul.f32 %v1949_v4, %v3605_v42  ;;  %v804_v38 = vand.u32 2147483648, %v3649_v20  ;;  %vm1315_vm2 = vcmp.gt.f32.partialorder %v3685_v46, 1e-08  ;;  %vm801_vm3 = vcmp.eq.f32.partialorder %v3649_v20, inf }
 0x1ab   : > { %v1953_v0 = vpop.eup %1952  ;;  %v1446_v17 = vsel %vm1312_vm9, %v1382_v10, 1e+08  ;;  %v1173_v57 = vmul.f32 %v1947_v30, %v1109_v5  ;;  %v1048_v56 = vmul.f32 %v1951_v18, %v918_v28  ;;  %vm822_vm4 = vcmp.eq.f32.partialorder %v3665_v24, inf  ;;  %v2038_v30 = vld [vmem:[%s2283_s6 + $0x188] sm:$0xff]  ;;  %v2039_v10 = vld [vmem:[%s2283_s6 + $0x180] sm:$0xff] }
 0x1ac   : > { %v1955_v2 = vpop.eup %1954  ;;  %v1510_v60 = vmul.f32 %v2036_v25, %v1446_v17  ;;  %v1047_v21 = vmul.f32 %v1953_v0, %v917_v52  ;;  %v788_v6 = vsel %vm787_vm11, %v3605_v42, %v786_v48  ;;  %1968 = vrsqrt.f32 %v3703_v15 }
 0x1ad   : > { %v1381_v54 = vmul.f32 %v2412_v41, %v1173_v57  ;;  %v1112_v9 = vsub.f32 2.0, %v1048_v56  ;;  %v1050_v61 = vmul.f32 %v1955_v2, %v920_v8  ;;  %v3717_v37 = vsel %vm789_vm13, %v790_v50, %v788_v6  ;;  %v1957_v51 = vpop.eup %1956 }
 0x1ae   : > { %1574 = vst [vmem:[%s2584_s30 + $0x178] sm:$0xff] %v1510_v60  ;;  %v1111_v29 = vsub.f32 2.0, %v1047_v21  ;;  %v921_v27 = vmax.f32 %v3717_v37, 1e-30  ;;  %v1049_v19 = vmul.f32 %v1957_v51, %v919_v22  ;;  %vm1318_vm5 = vcmp.gt.f32.partialorder %v3691_v43, 1e-08 }
 0x1af   : > { %v1959_v39 = vpop.eup %1958  ;;  %v1445_v12 = vsel %vm1311_vm10, %v1381_v54, 1e+08  ;;  %v1176_v42 = vmul.f32 %v1951_v18, %v1112_v9  ;;  %v1114_v45 = vsub.f32 2.0, %v1050_v61  ;;  %vm803_vm6 = vcmp.eq.f32.partialorder %v3649_v20, 0.0  ;;  %v2041_v60 = vld [vmem:[%s2283_s6 + $0x190] sm:$0xff]  ;;  %v2042_v54 = vld [vmem:[%s2283_s6 + $0x1a8] sm:$0xff] }
 0x1b0   : > { %v1961_v23 = vpop.eup %1960  ;;  %v1509_v28 = vmul.f32 %v2037_v32, %v1445_v12  ;;  %v1175_v52 = vmul.f32 %v1953_v0, %v1111_v29  ;;  %v1052_v62 = vmul.f32 %v1959_v39, %v922_v34  ;;  %1970 = vrcp.f32 %v921_v27 }
 0x1b1   : > { %vm824_vm7 = vcmp.eq.f32.partialorder %v3665_v24, 0.0  ;;  %v1963_v31 = vpop.eup %1962  ;;  %v1384_v58 = vmul.f32 %v2412_v41, %v1176_v42  ;;  %v1178_v13 = vmul.f32 %v1955_v2, %v1114_v45  ;;  %v1113_v8 = vsub.f32 2.0, %v1049_v19  ;;  %v3772_v2 = vpop.xlane.xlu0 %409 }
 0x1b2   : > { %v825_v49 = vand.u32 2147483648, %v3665_v24  ;;  %v1965_v11 = vpop.eup %1964  ;;  %1573 = vst [vmem:[%s2584_s30 + $0x170] sm:$0xff] %v1509_v28  ;;  %v1383_v36 = vmul.f32 %v2412_v41, %v1175_v52  ;;  %v1116_v55 = vsub.f32 2.0, %v1052_v62  ;;  %v807_v16 = vmul.f32 %v1961_v23, %v3638_v1 }
 0x1b3   : > { %v800_v22 = vmul.f32 %v1963_v31, %v3649_v20  ;;  %v1448_v59 = vsel %vm1314_vm12, %v1384_v58, 1e+08  ;;  %v1386_v53 = vmul.f32 %v2412_v41, %v1178_v13  ;;  %v1177_v34 = vmul.f32 %v1957_v51, %v1113_v8  ;;  %v1967_v26 = vpop.eup %1966 }
 0x1b4   : > { %v821_v7 = vmul.f32 %v1965_v11, %v3665_v24  ;;  %v1512_v3 = vmul.f32 %v2038_v30, %v1448_v59  ;;  %v1447_v35 = vsel %vm1313_vm14, %v1383_v36, 1e+08  ;;  %v1180_v4 = vmul.f32 %v1959_v39, %v1116_v55  ;;  %v2043_v55 = vld [vmem:[%s2283_s6 + $0x1a0] sm:$0xff] }
 0x1b5   : > { %v809_v63 = vsel %vm808_vm15, %v3638_v1, %v807_v16  ;;  %v1511_v5 = vmul.f32 %v2039_v10, %v1447_v35  ;;  %v1450_v18 = vsel %vm1316_vm0, %v1386_v53, 1e+08  ;;  %v1385_v48 = vmul.f32 %v2412_v41, %v1177_v34  ;;  %v3799_v32 = vpop.xlane.xlu0 %413 }
 0x1b6   : > { %v812_v50 = vsel %vm810_vm1, %v811_v44, %v809_v63  ;;  %1576 = vst [vmem:[%s2584_s30 + $0x188] sm:$0xff] %v1512_v3  ;;  %v1514_v0 = vmul.f32 %v2040_v47, %v1450_v18  ;;  %v1388_v17 = vmul.f32 %v2412_v41, %v1180_v4  ;;  %vm815_vm8 = vcmp.eq.f32.partialorder %v3677_v14, inf  ;;  %v1969_v25 = vpop.eup %1968 }
 0x1b7   : > { %v924_v57 = vmax.f32 %v812_v50, 1e-30  ;;  %1575 = vst [vmem:[%s2584_s30 + $0x180] sm:$0xff] %v1511_v5  ;;  %v1449_v33 = vsel %vm1315_vm2, %v1385_v48, 1e+08  ;;  %v802_v56 = vsel %vm801_vm3, %v3649_v20, %v800_v22  ;;  %v823_v1 = vsel %vm822_vm4, %v3665_v24, %v821_v7 }
 0x1b8   : > { %v814_v44 = vmul.f32 %v1967_v26, %v3677_v14  ;;  %1578 = vst [vmem:[%s2584_s30 + $0x198] sm:$0xff] %v1514_v0  ;;  %v1513_v21 = vmul.f32 %v2041_v60, %v1449_v33  ;;  %v1452_v46 = vsel %vm1318_vm5, %v1388_v17, 1e+08  ;;  %v818_v6 = vand.u32 2147483648, %v3677_v14 }
 0x1b9   : > { %1972 = vrcp.f32 %v924_v57  ;;  %v1516_v9 = vmul.f32 %v2042_v54, %v1452_v46  ;;  %v805_v61 = vsel %vm803_vm6, %v804_v38, %v802_v56  ;;  %v826_v51 = vsel %vm824_vm7, %v825_v49, %v823_v1  ;;  %v3796_v38 = vpop.xlane.xlu1 %415  ;;  %v3819_v36 = vpop.xlane.xlu0 %417 }
 0x1ba   : > { %v816_v29 = vsel %vm815_vm8, %v3677_v14, %v814_v44  ;;  %v1971_v39 = vpop.eup %1970  ;;  %1577 = vst [vmem:[%s2584_s30 + $0x190] sm:$0xff] %v1513_v21  ;;  %v923_v43 = vmax.f32 %v805_v61, 1e-30  ;;  %v926_v12 = vmax.f32 %v826_v51, 1e-30  ;;  %vm817_vm9 = vcmp.eq.f32.partialorder %v3677_v14, 0.0 }
 0x1bb   : > { %1580 = vst [vmem:[%s2584_s30 + $0x1a8] sm:$0xff] %v1516_v9  ;;  %v1051_v42 = vmul.f32 %v1971_v39, %v921_v27  ;;  %v819_v45 = vsel %vm817_vm9, %v818_v6, %v816_v29  ;;  %v835_v20 = vmul.f32 %v1969_v25, %v3703_v15  ;;  %vm836_vm10 = vcmp.eq.f32.partialorder %v3703_v15, inf  ;;  %v2044_v44 = vld [vmem:[%s2283_s6 + $0x1b8] sm:$0xff] }
 0x1bc   : > { %1974 = vrcp.f32 %v923_v43  ;;  %v925_v24 = vmax.f32 %v819_v45, 1e-30  ;;  %v1253_v14 = vmul.f32 %v2410_v40, %v3717_v37  ;;  %v839_v27 = vand.u32 2147483648, %v3703_v15 }
 0x1bd   : > { %v1115_v19 = vsub.f32 2.0, %v1051_v42  ;;  %1976 = vrcp.f32 %v926_v12  ;;  %v837_v23 = vsel %vm836_vm10, %v3703_v15, %v835_v20  ;;  %vm838_vm11 = vcmp.eq.f32.partialorder %v3703_v15, 0.0  ;;  %v3814_v15 = vpop.xlane.xlu1 %419 }
 0x1be   : > { %1978 = vrcp.f32 %v925_v24  ;;  %v3806_v52 = vsel %vm838_vm11, %v839_v27, %v837_v23  ;;  %vm1317_vm12 = vcmp.gt.f32.partialorder %v1253_v14, 1e-08  ;;  %v1256_v37 = vmul.f32 %v2410_v40, %v812_v50 }
 0x1bf   : > { %v1179_v28 = vmul.f32 %v1971_v39, %v1115_v19  ;;  %1980 = vrsqrt.f32 %v3772_v2  ;;  %v928_v31 = vmax.f32 %v3806_v52, 1e-30  ;;  %v1255_v13 = vmul.f32 %v2410_v40, %v805_v61  ;;  %v2045_v19 = vld [vmem:[%s2283_s6 + $0x1b0] sm:$0xff] }
 0x1c0   : > { %1982 = vrsqrt.f32 %v3796_v38  ;;  %v3817_v11 = vmul.f32 %v2410_v40, %v826_v51  ;;  %v3823_v22 = vmul.f32 %v2410_v40, %v819_v45  ;;  %vm1320_vm13 = vcmp.gt.f32.partialorder %v1256_v37, 1e-08 }
 0x1c1   : > { %v1387_v62 = vmul.f32 %v2412_v41, %v1179_v28  ;;  %1984 = vrsqrt.f32 %v3799_v32  ;;  %vm1319_vm14 = vcmp.gt.f32.partialorder %v1255_v13, 1e-08  ;;  %vm829_vm0 = vcmp.eq.f32.partialorder %v3772_v2, inf  ;;  %v2046_v28 = vld [vmem:[%s2283_s6 + $0x1c8] sm:$0xff] }
 0x1c2   : > { %1986 = vrcp.f32 %v928_v31  ;;  %vm1322_vm15 = vcmp.gt.f32.partialorder %v3817_v11, 1e-08  ;;  %vm831_vm1 = vcmp.eq.f32.partialorder %v3772_v2, 0.0  ;;  %vm1321_vm2 = vcmp.gt.f32.partialorder %v3823_v22, 1e-08 }
 0x1c3   : > { %v1973_v58 = vpop.eup %1972  ;;  %v1451_v8 = vsel %vm1317_vm12, %v1387_v62, 1e+08  ;;  %1988 = vrsqrt.f32 %v3814_v15  ;;  %v832_v35 = vand.u32 2147483648, %v3772_v2  ;;  %vm850_vm3 = vcmp.eq.f32.partialorder %v3796_v38, inf }
 0x1c4   : > { %v1054_v49 = vmul.f32 %v1973_v58, %v924_v57  ;;  %v1515_v16 = vmul.f32 %v2043_v55, %v1451_v8  ;;  %1990 = vrsqrt.f32 %v3819_v36  ;;  %vm852_vm4 = vcmp.eq.f32.partialorder %v3796_v38, 0.0 }
 0x1c5   : > { %v3838_v18 = vmul.f32 %v2410_v40, %v3806_v52  ;;  %v853_v0 = vand.u32 2147483648, %v3796_v38  ;;  %vm843_vm5 = vcmp.eq.f32.partialorder %v3799_v32, inf  ;;  %vm845_vm6 = vcmp.eq.f32.partialorder %v3799_v32, 0.0 }
 0x1c6   : > { %v1118_v59 = vsub.f32 2.0, %v1054_v49  ;;  %v1975_v53 = vpop.eup %1974  ;;  %1579 = vst [vmem:[%s2584_s30 + $0x1a0] sm:$0xff] %v1515_v16  ;;  %vm864_vm8 = vcmp.eq.f32.partialorder %v3814_v15, inf  ;;  %v867_v22 = vand.u32 2147483648, %v3814_v15  ;;  %vm857_vm9 = vcmp.eq.f32.partialorder %v3819_v36, inf }
 0x1c7   : > { %v1977_v34 = vpop.eup %1976  ;;  %v1053_v26 = vmul.f32 %v1975_v53, %v923_v43  ;;  %v846_v43 = vand.u32 2147483648, %v3799_v32  ;;  %vm1324_vm7 = vcmp.gt.f32.partialorder %v3838_v18, 1e-08  ;;  %vm866_vm10 = vcmp.eq.f32.partialorder %v3814_v15, 0.0 }
 0x1c8   : > { %v1182_v7 = vmul.f32 %v1973_v58, %v1118_v59  ;;  %v1979_v30 = vpop.eup %1978  ;;  %v1056_v3 = vmul.f32 %v1977_v34, %v926_v12  ;;  %vm859_vm11 = vcmp.eq.f32.partialorder %v3819_v36, 0.0 }
 0x1c9   : > { %v1981_v4 = vpop.eup %1980  ;;  %v1117_v10 = vsub.f32 2.0, %v1053_v26  ;;  %v1055_v5 = vmul.f32 %v1979_v30, %v925_v24  ;;  %v2048_v26 = vld [vmem:[%s2283_s6 + $0x1d8] sm:$0xff] }
 0x1ca   : > { %v1390_v63 = vmul.f32 %v2412_v41, %v1182_v7  ;;  %v1983_v48 = vpop.eup %1982  ;;  %v1120_v50 = vsub.f32 2.0, %v1056_v3  ;;  %v828_v47 = vmul.f32 %v1981_v4, %v3772_v2 }
 0x1cb   : > { %v1181_v57 = vmul.f32 %v1975_v53, %v1117_v10  ;;  %v1119_v33 = vsub.f32 2.0, %v1055_v5  ;;  %v849_v56 = vmul.f32 %v1983_v48, %v3796_v38  ;;  %v1985_v1 = vpop.eup %1984  ;;  %v860_v53 = vand.u32 2147483648, %v3819_v36 }
 0x1cc   : > { %v1454_v17 = vsel %vm1320_vm13, %v1390_v63, 1e+08  ;;  %v1184_v60 = vmul.f32 %v1977_v34, %v1120_v50  ;;  %v830_v21 = vsel %vm829_vm0, %v3772_v2, %v828_v47  ;;  %v1987_v46 = vpop.eup %1986  ;;  %v842_v20 = vmul.f32 %v1985_v1, %v3799_v32 }
 0x1cd   : > { %v1518_v25 = vmul.f32 %v2044_v44, %v1454_v17  ;;  %v1389_v6 = vmul.f32 %v2412_v41, %v1181_v57  ;;  %v1183_v54 = vmul.f32 %v1979_v30, %v1119_v33  ;;  %v833_v9 = vsel %vm831_vm1, %v832_v35, %v830_v21  ;;  %v1989_v12 = vpop.eup %1988 }
 0x1ce   : > { %v851_v61 = vsel %vm850_vm3, %v3796_v38, %v849_v56  ;;  %v1392_v51 = vmul.f32 %v2412_v41, %v1184_v60  ;;  %v1058_v29 = vmul.f32 %v1987_v46, %v928_v31  ;;  %v927_v39 = vmax.f32 %v833_v9, 1e-30  ;;  %v1991_v24 = vpop.eup %1990  ;;  %v2047_v31 = vld [vmem:[%s2283_s6 + $0x1c0] sm:$0xff]  ;;  %v2049_v60 = vld [vmem:[%s2283_s6 + $0x1d0] sm:$0xff] }
 0x1cf   : > { %1582 = vst [vmem:[%s2584_s30 + $0x1b8] sm:$0xff] %v1518_v25  ;;  %v1453_v42 = vsel %vm1319_vm14, %v1389_v6, 1e+08  ;;  %v1391_v2 = vmul.f32 %v2412_v41, %v1183_v54  ;;  %v854_v45 = vsel %vm852_vm4, %v853_v0, %v851_v61  ;;  %v844_v13 = vsel %vm843_vm5, %v3799_v32, %v842_v20 }
 0x1d0   : > { %v1517_v23 = vmul.f32 %v2045_v19, %v1453_v42  ;;  %v1456_v14 = vsel %vm1322_vm15, %v1392_v51, 1e+08  ;;  %v1122_v27 = vsub.f32 2.0, %v1058_v29  ;;  %1992 = vrcp.f32 %v927_v39 }
 0x1d1   : > { %v1520_v52 = vmul.f32 %v2046_v28, %v1456_v14  ;;  %v1455_v62 = vsel %vm1321_vm2, %v1391_v2, 1e+08  ;;  %v930_v38 = vmax.f32 %v854_v45, 1e-30  ;;  %v847_v8 = vsel %vm845_vm6, %v846_v43, %v844_v13 }
 0x1d2   : > { %1581 = vst [vmem:[%s2584_s30 + $0x1b0] sm:$0xff] %v1517_v23  ;;  %v1519_v58 = vmul.f32 %v2047_v31, %v1455_v62  ;;  %v1186_v37 = vmul.f32 %v1987_v46, %v1122_v27  ;;  %v863_v49 = vmul.f32 %v1989_v12, %v3814_v15  ;;  %v856_v11 = vmul.f32 %v1991_v24, %v3819_v36  ;;  %v2051_v23 = vld [vmem:[%s2283_s6 + $0x1e0] sm:$0xff]  ;;  %v2053_v31 = vld [vmem:[%s2283_s6 + $0x1f0] sm:$0xff] }
 0x1d3   : > { %1584 = vst [vmem:[%s2584_s30 + $0x1c8] sm:$0xff] %v1520_v52  ;;  %1994 = vrcp.f32 %v930_v38  ;;  %v929_v16 = vmax.f32 %v847_v8, 1e-30  ;;  %v1259_v18 = vmul.f32 %v2410_v40, %v833_v9  ;;  %v1262_v17 = vmul.f32 %v2410_v40, %v854_v45 }
 0x1d4   : > { %1583 = vst [vmem:[%s2584_s30 + $0x1c0] sm:$0xff] %v1519_v58  ;;  %v1394_v55 = vmul.f32 %v2412_v41, %v1186_v37  ;;  %v865_v59 = vsel %vm864_vm8, %v3814_v15, %v863_v49  ;;  %v858_v32 = vsel %vm857_vm9, %v3819_v36, %v856_v11  ;;  %v1261_v6 = vmul.f32 %v2410_v40, %v847_v8 }
 0x1d5   : > { %1996 = vrcp.f32 %v929_v16  ;;  %v868_v7 = vsel %vm866_vm10, %v867_v22, %v865_v59  ;;  %v861_v35 = vsel %vm859_vm11, %v860_v53, %v858_v32  ;;  %vm1323_vm12 = vcmp.gt.f32.partialorder %v1259_v18, 1e-08 }
 0x1d6   : > { %v1458_v34 = vsel %vm1324_vm7, %v1394_v55, 1e+08  ;;  %v932_v3 = vmax.f32 %v868_v7, 1e-30  ;;  %v931_v4 = vmax.f32 %v861_v35, 1e-30  ;;  %v1264_v42 = vmul.f32 %v2410_v40, %v868_v7 }
 0x1d7   : > { %v1522_v30 = vmul.f32 %v2048_v26, %v1458_v34  ;;  %vm1326_vm13 = vcmp.gt.f32.partialorder %v1262_v17, 1e-08  ;;  %vm1325_vm14 = vcmp.gt.f32.partialorder %v1261_v6, 1e-08  ;;  %v1263_v20 = vmul.f32 %v2410_v40, %v861_v35  ;;  %v2052_v40 = vld [vmem:[%s2283_s6 + $0x1f8] sm:$0xff] }
 0x1d8   : > { %1998 = vrcp.f32 %v932_v3  ;;  %vm1328_vm15 = vcmp.gt.f32.partialorder %v1264_v42, 1e-08 }
 0x1d9   : > { %1586 = vst [vmem:[%s2584_s30 + $0x1d8] sm:$0xff] %v1522_v30  ;;  %2000 = vrcp.f32 %v931_v4  ;;  %vm1327_vm0 = vcmp.gt.f32.partialorder %v1263_v20, 1e-08 }
 0x1da   : > { %v1993_v63 = vpop.eup %1992 }
 0x1db   : > { %v1057_v15 = vmul.f32 %v1993_v63, %v927_v39  ;;  %v2050_v39 = vld [vmem:[%s2283_s6 + $0x1e8] sm:$0xff] }
 0x1dd   : > { %v1995_v10 = vpop.eup %1994  ;;  %v1121_v5 = vsub.f32 2.0, %v1057_v15 }
 0x1de   : > { %v1060_v48 = vmul.f32 %v1995_v10, %v930_v38 }
 0x1df   : > { %v1185_v50 = vmul.f32 %v1993_v63, %v1121_v5  ;;  %v1997_v47 = vpop.eup %1996 }
 0x1e0   : > { %v1124_v0 = vsub.f32 2.0, %v1060_v48  ;;  %v1059_v57 = vmul.f32 %v1997_v47, %v929_v16 }
 0x1e1   : > { %v1393_v36 = vmul.f32 %v2412_v41, %v1185_v50 }
 0x1e2   : > { %v1188_v33 = vmul.f32 %v1995_v10, %v1124_v0  ;;  %v1999_v56 = vpop.eup %1998  ;;  %v1123_v44 = vsub.f32 2.0, %v1059_v57 }
 0x1e3   : > { %v1457_v1 = vsel %vm1323_vm12, %v1393_v36, 1e+08  ;;  %v2001_v25 = vpop.eup %2000  ;;  %v1062_v54 = vmul.f32 %v1999_v56, %v932_v3 }
 0x1e4   : > { %v1521_v21 = vmul.f32 %v2049_v60, %v1457_v1  ;;  %v1396_v46 = vmul.f32 %v2412_v41, %v1188_v33  ;;  %v1187_v9 = vmul.f32 %v1997_v47, %v1123_v44  ;;  %v1061_v61 = vmul.f32 %v2001_v25, %v931_v4 }
 0x1e5   : > { %v1126_v29 = vsub.f32 2.0, %v1062_v54 }
 0x1e6   : > { %1585 = vst [vmem:[%s2584_s30 + $0x1d0] sm:$0xff] %v1521_v21  ;;  %v1460_v51 = vsel %vm1326_vm13, %v1396_v46, 1e+08  ;;  %v1395_v12 = vmul.f32 %v2412_v41, %v1187_v9  ;;  %v1125_v2 = vsub.f32 2.0, %v1061_v61 }
 0x1e7   : > { %v1524_v43 = vmul.f32 %v2050_v39, %v1460_v51  ;;  %v1190_v45 = vmul.f32 %v1999_v56, %v1126_v29 }
 0x1e8   : > { %v1459_v24 = vsel %vm1325_vm14, %v1395_v12, 1e+08  ;;  %v1189_v19 = vmul.f32 %v2001_v25, %v1125_v2 }
 0x1e9   : > { %1588 = vst [vmem:[%s2584_s30 + $0x1e8] sm:$0xff] %v1524_v43  ;;  %v1523_v14 = vmul.f32 %v2051_v23, %v1459_v24  ;;  %v1398_v27 = vmul.f32 %v2412_v41, %v1190_v45 }
 0x1ea   : > { %v1397_v28 = vmul.f32 %v2412_v41, %v1189_v19 }
 0x1eb   : > { %1587 = vst [vmem:[%s2584_s30 + $0x1e0] sm:$0xff] %v1523_v14  ;;  %v1462_v52 = vsel %vm1328_vm15, %v1398_v27, 1e+08 }
 0x1ec   : > { %v1526_v62 = vmul.f32 %v2052_v40, %v1462_v52  ;;  %v1461_v38 = vsel %vm1327_vm0, %v1397_v28, 1e+08 }
 0x1ed   : > { %v1525_v58 = vmul.f32 %v2053_v31, %v1461_v38 }
 0x1ee   : > { %1590 = vst [vmem:[%s2584_s30 + $0x1f8] sm:$0xff] %v1526_v62 }
 0x1ef   : > { %1589 = vst [vmem:[%s2584_s30 + $0x1f0] sm:$0xff] %v1525_v58 }
 0x1f0   : > { %2097 = shalt.err (!%p2094_p2)
}
 0x1f1   : > { %s2098_s24 = scalar_lea.hbm %s3917_s14, 8192  ;;  %s2102_s29 = scalar_lea.hbm %s3968_s2, 16384 }
 0x1f2   : > { %p2099_p4 = scmp.ne.s32.totalorder %s3917_s14, %s2098_s24  ;;  %p2103_p9 = scmp.lt.u32.totalorder %s3917_s14, %s3968_s2 }
 0x1f3   : > { %p2104_p1 = scmp.lt.u32.totalorder %s2102_s29, %s2098_s24  ;;  %p2106_p6 = scmp.lt.u32.totalorder %s2098_s24, %s3917_s14 }
 0x1f4   : > { %p2100_p5 = pnand %p2099_p4, %p3975_p11 }
 0x1f5   : > { %p2105_p3 = por %p2104_p1, %p2103_p9 }
 0x1f6   : > { %p2101_p7 = pneg %p2100_p5 }
 0x1f7   : > { %p2107_p12 = por %p2106_p6, %p2105_p3 }
 0x1f9   : > { %p2108_p13 = pnand %p2107_p12, %p2101_p7 }
 0x1fb   : > { %2111 = shalt.err (!%p2108_p13)
}
 0x1fc   : > { %s2156_s20 = smov 128   ;;  %s2157_s28 = smov 8  }
 0x1fd   : > { %1696 = dma.vmem_to_hbm [thread:$0]  (%p3975_p11), %s3919_s4, 8192, %s3917_s14, %s1592_s13, %s2156_s20, %s2156_s20, %s2157_s28  }
 0x1fe PF: > { %s1620_s30 = sand.u32 1, %s2138_s9   ;;  %p3976_p8 = scmp.ne.s32.totalorder %s3973_s22, 0 }
 0x1ff   : > { %p3977_p10 = scmp.ge.s32.totalorder %s2150_s12, 2  ;;  %s1621_s3 = scalar_lea.sflag [#allocation4], %s1620_s30 }
 0x201   : > { %p1703_p0 = pnand %p3977_p10, %p3976_p8 }
 0x203   : > { %2133 = dma.done.wait (!%p1703_p0), %s1621_s3, 8192  }
 0x204   : > { %2135 = vsyncadd (!%p1703_p0), %s1621_s3, 4294959104  ;;  %p15_p2 = scmp.ge.s32.totalorder %s2198_s15, 4   ;;  %s3978_s9 = smov %s2142_s10 }
 0x205   : > { %s3979_s10 = smov %s2146_s11  ;;  %s3980_s11 = smov %s2210_s18 }
 0x206   : > { %s3981_s12 = smov %s2198_s15  ;;  %17 = sbr.rel (!%p15_p2) target bundleno = 5 (0x5), region = 73 }
 0x20d   :  { %1626 = vsyncpa [#allocation3], 1 }
 0x20e   :  { %1628 = vsyncpa [#allocation3 + $0x1], 1 }
 0x20f   :  { %1629 = vsyncpa [#allocation4], 1 }
 0x210   :  { %1631 = vsyncpa [#allocation4 + $0x1], 1 }

</bundles_post_ra>
